<compile_context>
chip_gen: v5e
topology: v5e:2x2
jax: 0.10.0
libtpu: 0.0.40
codegen_flags: <defaults>
</compile_context>

<pallas_src>
import jax
import jax.numpy as jnp
from jax import lax
from jax.experimental import pallas as pl
from jax.experimental.pallas import tpu as pltpu


def _round_up(x, m):
    return (x + m - 1) // m * m


# ---------------------------------------------------------------------------
# Fused kernel
# ---------------------------------------------------------------------------
def _make_fused_kernel(T, B, RB, H, n_seq_layers, n_ctx_layers, unroll):
    """RB = rows per time step (2B padded up to a multiple of 8)."""
    B2 = 2 * B
    f32 = jnp.float32

    def kernel(pre0_ref, wh0_ref, *rest):
        # rest layout:
        #   [wx, wh, b] * (n_seq_layers - 1), [wx, wh, b] * n_ctx_layers,
        #   lin_w, lin_b, out_ref, buf_ref, pre_ref
        o = 0
        seq_rest = []
        for _ in range(n_seq_layers - 1):
            seq_rest.append((rest[o], rest[o + 1], rest[o + 2]))
            o += 3
        ctx_layers = []
        for _ in range(n_ctx_layers):
            ctx_layers.append((rest[o], rest[o + 1], rest[o + 2]))
            o += 3
        lw_ref = rest[o]
        lb_ref = rest[o + 1]
        out_ref = rest[o + 2]
        buf_ref = rest[o + 3]          # (T*RB, H)  inter-layer hidden states
        pre_ref = rest[o + 4]          # (T*RB, 4H) per-layer pre-activations

        # Gate-select masks, hoisted out of all time loops (JAX does not CSE
        # broadcast_in_dim).  PyTorch gate order is [i, f, g, o].
        lane_seq = lax.broadcasted_iota(jnp.int32, (RB, 4 * H), 1)
        is_g_seq = jnp.logical_and(lane_seq >= 2 * H, lane_seq < 3 * H)
        lane_ctx = lax.broadcasted_iota(jnp.int32, (B, 4 * H), 1)
        is_g_ctx = jnp.logical_and(lane_ctx >= 2 * H, lane_ctx < 3 * H)

        def split_acts(gates, is_g):
            # ONE EUP pass (sigmoid) over the full (rows, 4H) tile.
            # g-gate columns were pre-scaled by 2 so tanh(g) = 2*sigmoid(2g)-1.
            s = jax.nn.sigmoid(gates)
            acts = jnp.where(is_g, 2.0 * s - 1.0, s)
            return (acts[:, 0:H], acts[:, H:2 * H],
                    acts[:, 2 * H:3 * H], acts[:, 3 * H:4 * H])

        zeros_seq = jnp.zeros((RB, H), f32)

        # ---- shared word-level LSTM stack over answer||query (one pass) -----
        c_fin = zeros_seq
        for l in range(n_seq_layers):
            if l == 0:
                wh = wh0_ref[...]
                pre_view = pre0_ref            # layer-0 preact gathered outside
            else:
                wx_ref, wh_ref, b_ref = seq_rest[l - 1]
                wx = wx_ref[...]
                wh = wh_ref[...]
                # Hoisted input projection: ONE (T*RB, H) @ (H, 4H) matmul,
                # bias folded in.  No x@Wx on the serial critical path.
                pre_ref[...] = (jnp.dot(buf_ref[...].astype(wx.dtype), wx,
                                        preferred_element_type=f32)
                                + b_ref[...])
                pre_view = pre_ref
            write_out = l < n_seq_layers - 1    # last layer's out_seq is dead
            wdt = wh.dtype

            def step(t, carry, wh=wh, pre_view=pre_view,
                     write_out=write_out, wdt=wdt):
                h, c = carry
                r0 = pl.multiple_of(t * RB, RB)              # 8-aligned rows
                gates = (pre_view[pl.ds(r0, RB), :]
                         + jnp.dot(h.astype(wdt), wh,
                                   preferred_element_type=f32))
                i_g, f_g, g_g, o_g = split_acts(gates, is_g_seq)
                c_new = f_g * c + i_g * g_g
                h_new = o_g * jnp.tanh(c_new)
                if write_out:
                    # safe: layer l's projection already consumed buf_ref
                    buf_ref[pl.ds(r0, RB), :] = h_new
                return (h_new, c_new)

            _, c_fin = lax.fori_loop(0, T, step, (zeros_seq, zeros_seq),
                                     unroll=unroll)

        # ---- context LSTM over [c_answer, c_query] (seq len 2, static) ------
        xs = [c_fin[0:B, :], c_fin[B:B2, :]]
        c_ctx = jnp.zeros((B, H), f32)
        for (wx_ref, wh_ref, b_ref) in ctx_layers:
            wx = wx_ref[...]
            wh = wh_ref[...]
            bias = b_ref[...]
            wdt = wx.dtype
            h_ctx = jnp.zeros((B, H), f32)
            c_ctx = jnp.zeros((B, H), f32)
            new_xs = []
            for t in range(2):
                gates = (jnp.dot(xs[t].astype(wdt), wx,
                                 preferred_element_type=f32)
                         + jnp.dot(h_ctx.astype(wdt), wh,
                                   preferred_element_type=f32)
                         + bias)
                i_g, f_g, g_g, o_g = split_acts(gates, is_g_ctx)
                c_ctx = f_g * c_ctx + i_g * g_g
                h_ctx = o_g * jnp.tanh(c_ctx)
                new_xs.append(h_ctx)
            xs = new_xs

        # ---- fused linear head: (B, H) @ (H, 2) + (1, 2) ---------------------
        out_ref[...] = (jnp.dot(c_ctx, lw_ref[...],
                                preferred_element_type=f32)
                        + lb_ref[...])

    return kernel


# ---------------------------------------------------------------------------
# Parameter preparation (done once, outside the forward)
# ---------------------------------------------------------------------------
def prepare_params(params, *, weight_dtype=jnp.float32):
    """Convert PyTorch-layout params into the kernel's layout.

    weight_dtype: jnp.bfloat16 gives bf16 MXU matmuls (state stays f32);
    default f32 keeps exact reference numerics.
    """
    H = params["lstm"][0][1].shape[1]            # w_hh is (4H, H)

    # Scale the g-gate block of the 4H axis by 2 -> tanh(g) = 2*sigmoid(2g)-1.
    gate_scale = jnp.concatenate([jnp.ones((2 * H,), jnp.float32),
                                  jnp.full((H,), 2.0, jnp.float32),
                                  jnp.ones((H,), jnp.float32)])

    def prep_layer(w_ih, w_hh, b_ih, b_hh):
        wx = jnp.transpose(w_ih).astype(jnp.float32) * gate_scale     # (D, 4H)
        wh = jnp.transpose(w_hh).astype(jnp.float32) * gate_scale     # (H, 4H)
        b = ((b_ih + b_hh).astype(jnp.float32) * gate_scale).reshape(1, -1)
        return wx, wh, b

    # Layer 0 of the word LSTM: fold its input projection + bias into a
    # pre-projected embedding table: row v = emb[v] @ Wx0 + b0  -> (V, 4H).
    wx0, wh0, b0 = prep_layer(*params["lstm"][0])
    emb_proj = params["embed"].astype(jnp.float32) @ wx0 + b0          # (V, 4H)

    def cast_w(w):
        return w.astype(weight_dtype)

    seq_rest = []
    for (w_ih, w_hh, b_ih, b_hh) in params["lstm"][1:]:
        wx, wh, b = prep_layer(w_ih, w_hh, b_ih, b_hh)
        seq_rest.append((cast_w(wx), cast_w(wh), b))

    ctx = []
    for (w_ih, w_hh, b_ih, b_hh) in params["lstm_context"]:
        wx, wh, b = prep_layer(w_ih, w_hh, b_ih, b_hh)
        ctx.append((cast_w(wx), cast_w(wh), b))

    return {
        "emb_proj": emb_proj,                                  # (V, 4H) f32
        "wh0": cast_w(wh0),                                    # (H, 4H)
        "seq_rest": seq_rest,                                  # layers 1..L-1
        "ctx": ctx,                                            # context layers
        "lin_w": jnp.transpose(params["lin_w"]).astype(jnp.float32),  # (H, 2)
        "lin_b": params["lin_b"].astype(jnp.float32).reshape(1, -1),  # (1, 2)
    }


# ---------------------------------------------------------------------------
# Forward wrapper: ONE pallas_call for the whole model
# ---------------------------------------------------------------------------
@jax.jit
def hier_rnn_forward(prepped, answer, query):
    """answer/query: (T, B) int32 token ids.  Returns (B, 2) float32 logits."""
    T, B = answer.shape
    B2 = 2 * B
    RB = _round_up(B2, 8)                       # sublane-dense row count
    H = prepped["wh0"].shape[0]
    fourH = prepped["wh0"].shape[1]
    L_seq = 1 + len(prepped["seq_rest"])
    L_ctx = len(prepped["ctx"])

    # batch-concat: columns [0:B]=answer, [B:2B]=query, [2B:RB]=pad (token 0)
    ids = jnp.concatenate([answer, query], axis=1).astype(jnp.int32)   # (T, 2B)
    if RB > B2:
        ids = jnp.pad(ids, ((0, 0), (0, RB - B2)))                      # (T, RB)
    # Pre-gathered, pre-projected layer-0 pre-activations (XLA gather, outside
    # the serial recurrence):
    pre0 = jnp.take(prepped["emb_proj"], ids.reshape(-1), axis=0)       # (T*RB, 4H)

    inputs = [pre0, prepped["wh0"]]
    for wx, wh, b in prepped["seq_rest"]:
        inputs += [wx, wh, b]
    for wx, wh, b in prepped["ctx"]:
        inputs += [wx, wh, b]
    inputs += [prepped["lin_w"], prepped["lin_b"]]

    scratch = [pltpu.VMEM((T * RB, H), jnp.float32),       # inter-layer hiddens
               pltpu.VMEM((T * RB, fourH), jnp.float32)]   # per-layer preacts

    # Explicit VMEM limit sized from the real footprint (headroom, v7x-safe cap).
    nbytes = sum(int(x.size) * x.dtype.itemsize for x in inputs)
    nbytes += (T * RB * H + T * RB * fourH) * 4 + B * 2 * 4
    vmem_limit = int(min(56 << 20, max(2 * nbytes + (4 << 20), 16 << 20)))

    kernel = _make_fused_kernel(T, B, RB, H, L_seq, L_ctx,
                                unroll=max(1, min(T, 8)))

    # TODO(synk): on v7x, split the batch across the 2 TensorCores with a
    # grid=(2,) parallel axis; omitted here (single-program is optimal for
    # 1-TC v5e/v6e and these toy shapes).
    return pl.pallas_call(
        kernel,
        out_shape=jax.ShapeDtypeStruct((B, 2), jnp.float32),
        in_specs=[pl.BlockSpec(memory_space=pltpu.MemorySpace.VMEM)]
        * len(inputs),
        out_specs=pl.BlockSpec(memory_space=pltpu.MemorySpace.VMEM),
        scratch_shapes=scratch,
        compiler_params=pltpu.CompilerParams(vmem_limit_bytes=vmem_limit),
    )(*inputs)


# ---------------------------------------------------------------------------
# Pure-JAX reference (correctness check only)
# ---------------------------------------------------------------------------
def _ref_lstm_layer(x, w_ih, w_hh, b_ih, b_hh):
    T, B, _ = x.shape
    H = w_hh.shape[1]

    def step(carry, x_t):
        h, c = carry
        g = x_t @ w_ih.T + h @ w_hh.T + b_ih + b_hh
        i, f, gg, o = jnp.split(g, 4, axis=-1)
        c = jax.nn.sigmoid(f) * c + jax.nn.sigmoid(i) * jnp.tanh(gg)
        h = jax.nn.sigmoid(o) * jnp.tanh(c)
        return (h, c), h

    (h, c), out = lax.scan(step, (jnp.zeros((B, H)), jnp.zeros((B, H))), x)
    return out, h, c


def _ref_forward(params, answer, query):
    emb = params["embed"]

    def stack(x, layers):
        h = c = None
        for p in layers:
            x, h, c = _ref_lstm_layer(x, *p)
        return x, h, c

    _, _, ca = stack(jnp.take(emb, answer, axis=0), params["lstm"])
    _, _, cq = stack(jnp.take(emb, query, axis=0), params["lstm"])
    _, _, cc = stack(jnp.stack([ca, cq], axis=0), params["lstm_context"])
    return cc @ params["lin_w"].T + params["lin_b"]


# ---------------------------------------------------------------------------
# Parameter init (deterministic, mirrors PyTorch shapes)
# ---------------------------------------------------------------------------
def init_params(key, vocab, embed_size, hidden_size, num_layers):
    keys = jax.random.split(key, 64)
    ki = iter(range(64))
    H = hidden_size
    k = 1.0 / jnp.sqrt(H)

    def unif(shape):
        return jax.random.uniform(keys[next(ki)], shape, jnp.float32, -k, k)

    embed = jax.random.normal(keys[next(ki)], (vocab, embed_size), jnp.float32)
    embed = embed.at[0].set(0.0)                      # padding_idx=0

    def lstm_params(in0):
        layers = []
        for l in range(num_layers):
            d = in0 if l == 0 else H
            layers.append((unif((4 * H, d)), unif((4 * H, H)),
                           unif((4 * H,)), unif((4 * H,))))
        return layers

    return {
        "embed": embed,
        "lstm": lstm_params(embed_size),
        "lstm_context": lstm_params(H),
        "lin_w": unif((2, H)),
        "lin_b": unif((2,)),
    }


# ---------------------------------------------------------------------------
if __name__ == "__main__":
    vocab, embed_size, hidden_size, num_layers = 20, 16, 32, 2
    seq_len, batch = 8, 2

    key = jax.random.PRNGKey(0)
    k_params, k_a, k_q = jax.random.split(key, 3)
    params = init_params(k_params, vocab, embed_size, hidden_size, num_layers)
    prepped = prepare_params(params)          # f32 weights: exact semantics

    answer = jax.random.randint(k_a, (seq_len, batch), 0, vocab, jnp.int32)
    query = jax.random.randint(k_q, (seq_len, batch), 0, vocab, jnp.int32)

    out = jax.block_until_ready(hier_rnn_forward(prepped, answer, query))
    ref = jax.block_until_ready(_ref_forward(params, answer, query))

    assert out.shape == (batch, 2), out.shape
    assert jnp.allclose(out, ref, atol=5e-4, rtol=5e-4), (out, ref)

    print("KERNEL_OK")
</pallas_src>

<mosaic_0001>
module attributes {stable_mosaic.version = 11 : i64} {
  func.func @kernel(%arg0: memref<64x128xf32, #tpu.memory_space<vmem>>, %arg1: memref<32x128xf32, #tpu.memory_space<vmem>>, %arg2: memref<32x128xf32, #tpu.memory_space<vmem>>, %arg3: memref<32x128xf32, #tpu.memory_space<vmem>>, %arg4: memref<1x128xf32, #tpu.memory_space<vmem>>, %arg5: memref<32x128xf32, #tpu.memory_space<vmem>>, %arg6: memref<32x128xf32, #tpu.memory_space<vmem>>, %arg7: memref<1x128xf32, #tpu.memory_space<vmem>>, %arg8: memref<32x128xf32, #tpu.memory_space<vmem>>, %arg9: memref<32x128xf32, #tpu.memory_space<vmem>>, %arg10: memref<1x128xf32, #tpu.memory_space<vmem>>, %arg11: memref<32x2xf32, #tpu.memory_space<vmem>>, %arg12: memref<1x2xf32, #tpu.memory_space<vmem>>, %arg13: memref<2x2xf32, #tpu.memory_space<vmem>>, %arg14: memref<64x32xf32, #tpu.memory_space<vmem>>, %arg15: memref<64x128xf32, #tpu.memory_space<vmem>>) attributes {dimension_semantics = [], scalar_prefetch = 0 : i64, scratch_operands = 2 : i64, tpu.core_type = #tpu.core_type<tc>} {
    %0 = tpu.iota {dimensions = array<i32: 1>} : vector<8x128xi32>
    %c64_i32 = arith.constant 64 : i32
    %1 = vector.broadcast %c64_i32 : i32 to vector<8x128xi32>
    %2 = arith.cmpi sge, %0, %1 : vector<8x128xi32>
    %c96_i32 = arith.constant 96 : i32
    %3 = vector.broadcast %c96_i32 : i32 to vector<8x128xi32>
    %4 = arith.cmpi slt, %0, %3 : vector<8x128xi32>
    %5 = arith.andi %2, %4 : vector<8x128xi1>
    %6 = tpu.iota {dimensions = array<i32: 1>} : vector<2x128xi32>
    %c64_i32_0 = arith.constant 64 : i32
    %7 = vector.broadcast %c64_i32_0 : i32 to vector<2x128xi32>
    %8 = arith.cmpi sge, %6, %7 : vector<2x128xi32>
    %c96_i32_1 = arith.constant 96 : i32
    %9 = vector.broadcast %c96_i32_1 : i32 to vector<2x128xi32>
    %10 = arith.cmpi slt, %6, %9 : vector<2x128xi32>
    %11 = arith.andi %8, %10 : vector<2x128xi1>
    %cst = arith.constant 0.000000e+00 : f32
    %12 = vector.broadcast %cst : f32 to vector<8x32xf32>
    %c0 = arith.constant 0 : index
    %c0_2 = arith.constant 0 : index
    %13 = vector.load %arg1[%c0, %c0_2] : memref<32x128xf32, #tpu.memory_space<vmem>>, vector<32x128xf32>
    %c0_i32 = arith.constant 0 : i32
    %c8_i32 = arith.constant 8 : i32
    %14 = arith.muli %c0_i32, %c8_i32 : i32
    %15 = tpu.assume_multiple %14, 8 : i32
    %16 = arith.index_cast %15 : i32 to index
    %c0_3 = arith.constant 0 : index
    %17 = vector.load %arg0[%16, %c0_3] : memref<64x128xf32, #tpu.memory_space<vmem>>, vector<8x128xf32>
    %cst_4 = arith.constant dense<0.000000e+00> : vector<8x128xf32>
    %18 = tpu.matmul %12, %13, %cst_4 {dimension_numbers = #tpu.dot_dimension_numbers<[1], [0], [0], [1], [0, 0, 1, 1], [], []>} : vector<8x32xf32>, vector<32x128xf32>, vector<8x128xf32> -> vector<8x128xf32>
    %19 = arith.addf %17, %18 : vector<8x128xf32>
    %20 = arith.negf %19 : vector<8x128xf32>
    %21 = math.exp %20 : vector<8x128xf32>
    %cst_5 = arith.constant 1.000000e+00 : f32
    %22 = vector.broadcast %cst_5 : f32 to vector<8x128xf32>
    %23 = arith.addf %22, %21 : vector<8x128xf32>
    %24 = arith.divf %22, %23 : vector<8x128xf32>
    %cst_6 = arith.constant 2.000000e+00 : f32
    %25 = vector.broadcast %cst_6 : f32 to vector<8x128xf32>
    %26 = arith.mulf %25, %24 : vector<8x128xf32>
    %cst_7 = arith.constant 1.000000e+00 : f32
    %27 = vector.broadcast %cst_7 : f32 to vector<8x128xf32>
    %28 = arith.subf %26, %27 : vector<8x128xf32>
    %29 = arith.select %5, %28, %24 : vector<8x128xi1>, vector<8x128xf32>
    %30 = vector.extract_strided_slice %29 {offsets = [0, 0], sizes = [8, 32], strides = [1, 1]} : vector<8x128xf32> to vector<8x32xf32>
    %31 = vector.extract_strided_slice %29 {offsets = [0, 32], sizes = [8, 32], strides = [1, 1]} : vector<8x128xf32> to vector<8x32xf32>
    %32 = vector.extract_strided_slice %29 {offsets = [0, 64], sizes = [8, 32], strides = [1, 1]} : vector<8x128xf32> to vector<8x32xf32>
    %33 = vector.extract_strided_slice %29 {offsets = [0, 96], sizes = [8, 32], strides = [1, 1]} : vector<8x128xf32> to vector<8x32xf32>
    %34 = arith.mulf %31, %12 : vector<8x32xf32>
    %35 = arith.mulf %30, %32 : vector<8x32xf32>
    %36 = arith.addf %34, %35 : vector<8x32xf32>
    %37 = math.tanh %36 : vector<8x32xf32>
    %38 = arith.mulf %33, %37 : vector<8x32xf32>
    %39 = arith.index_cast %15 : i32 to index
    %c0_8 = arith.constant 0 : index
    %40 = vector.load %arg14[%39, %c0_8] : memref<64x32xf32, #tpu.memory_space<vmem>>, vector<8x32xf32>
    tpu.vector_store %arg14[%39, %c0_8], %38 {strides = array<i32>} : memref<64x32xf32, #tpu.memory_space<vmem>>, vector<8x32xf32>,
    %c1_i32 = arith.constant 1 : i32
    %c8_i32_9 = arith.constant 8 : i32
    %41 = arith.muli %c1_i32, %c8_i32_9 : i32
    %42 = tpu.assume_multiple %41, 8 : i32
    %43 = arith.index_cast %42 : i32 to index
    %c0_10 = arith.constant 0 : index
    %44 = vector.load %arg0[%43, %c0_10] : memref<64x128xf32, #tpu.memory_space<vmem>>, vector<8x128xf32>
    %cst_11 = arith.constant dense<0.000000e+00> : vector<8x128xf32>
    %45 = tpu.matmul %38, %13, %cst_11 {dimension_numbers = #tpu.dot_dimension_numbers<[1], [0], [0], [1], [0, 0, 1, 1], [], []>} : vector<8x32xf32>, vector<32x128xf32>, vector<8x128xf32> -> vector<8x128xf32>
    %46 = arith.addf %44, %45 : vector<8x128xf32>
    %47 = arith.negf %46 : vector<8x128xf32>
    %48 = math.exp %47 : vector<8x128xf32>
    %cst_12 = arith.constant 1.000000e+00 : f32
    %49 = vector.broadcast %cst_12 : f32 to vector<8x128xf32>
    %50 = arith.addf %49, %48 : vector<8x128xf32>
    %51 = arith.divf %49, %50 : vector<8x128xf32>
    %cst_13 = arith.constant 2.000000e+00 : f32
    %52 = vector.broadcast %cst_13 : f32 to vector<8x128xf32>
    %53 = arith.mulf %52, %51 : vector<8x128xf32>
    %cst_14 = arith.constant 1.000000e+00 : f32
    %54 = vector.broadcast %cst_14 : f32 to vector<8x128xf32>
    %55 = arith.subf %53, %54 : vector<8x128xf32>
    %56 = arith.select %5, %55, %51 : vector<8x128xi1>, vector<8x128xf32>
    %57 = vector.extract_strided_slice %56 {offsets = [0, 0], sizes = [8, 32], strides = [1, 1]} : vector<8x128xf32> to vector<8x32xf32>
    %58 = vector.extract_strided_slice %56 {offsets = [0, 32], sizes = [8, 32], strides = [1, 1]} : vector<8x128xf32> to vector<8x32xf32>
    %59 = vector.extract_strided_slice %56 {offsets = [0, 64], sizes = [8, 32], strides = [1, 1]} : vector<8x128xf32> to vector<8x32xf32>
    %60 = vector.extract_strided_slice %56 {offsets = [0, 96], sizes = [8, 32], strides = [1, 1]} : vector<8x128xf32> to vector<8x32xf32>
    %61 = arith.mulf %58, %36 : vector<8x32xf32>
    %62 = arith.mulf %57, %59 : vector<8x32xf32>
    %63 = arith.addf %61, %62 : vector<8x32xf32>
    %64 = math.tanh %63 : vector<8x32xf32>
    %65 = arith.mulf %60, %64 : vector<8x32xf32>
    %66 = arith.index_cast %42 : i32 to index
    %c0_15 = arith.constant 0 : index
    %67 = vector.load %arg14[%66, %c0_15] : memref<64x32xf32, #tpu.memory_space<vmem>>, vector<8x32xf32>
    tpu.vector_store %arg14[%66, %c0_15], %65 {strides = array<i32>} : memref<64x32xf32, #tpu.memory_space<vmem>>, vector<8x32xf32>,
    %c2_i32 = arith.constant 2 : i32
    %c8_i32_16 = arith.constant 8 : i32
    %68 = arith.muli %c2_i32, %c8_i32_16 : i32
    %69 = tpu.assume_multiple %68, 8 : i32
    %70 = arith.index_cast %69 : i32 to index
    %c0_17 = arith.constant 0 : index
    %71 = vector.load %arg0[%70, %c0_17] : memref<64x128xf32, #tpu.memory_space<vmem>>, vector<8x128xf32>
    %cst_18 = arith.constant dense<0.000000e+00> : vector<8x128xf32>
    %72 = tpu.matmul %65, %13, %cst_18 {dimension_numbers = #tpu.dot_dimension_numbers<[1], [0], [0], [1], [0, 0, 1, 1], [], []>} : vector<8x32xf32>, vector<32x128xf32>, vector<8x128xf32> -> vector<8x128xf32>
    %73 = arith.addf %71, %72 : vector<8x128xf32>
    %74 = arith.negf %73 : vector<8x128xf32>
    %75 = math.exp %74 : vector<8x128xf32>
    %cst_19 = arith.constant 1.000000e+00 : f32
    %76 = vector.broadcast %cst_19 : f32 to vector<8x128xf32>
    %77 = arith.addf %76, %75 : vector<8x128xf32>
    %78 = arith.divf %76, %77 : vector<8x128xf32>
    %cst_20 = arith.constant 2.000000e+00 : f32
    %79 = vector.broadcast %cst_20 : f32 to vector<8x128xf32>
    %80 = arith.mulf %79, %78 : vector<8x128xf32>
    %cst_21 = arith.constant 1.000000e+00 : f32
    %81 = vector.broadcast %cst_21 : f32 to vector<8x128xf32>
    %82 = arith.subf %80, %81 : vector<8x128xf32>
    %83 = arith.select %5, %82, %78 : vector<8x128xi1>, vector<8x128xf32>
    %84 = vector.extract_strided_slice %83 {offsets = [0, 0], sizes = [8, 32], strides = [1, 1]} : vector<8x128xf32> to vector<8x32xf32>
    %85 = vector.extract_strided_slice %83 {offsets = [0, 32], sizes = [8, 32], strides = [1, 1]} : vector<8x128xf32> to vector<8x32xf32>
    %86 = vector.extract_strided_slice %83 {offsets = [0, 64], sizes = [8, 32], strides = [1, 1]} : vector<8x128xf32> to vector<8x32xf32>
    %87 = vector.extract_strided_slice %83 {offsets = [0, 96], sizes = [8, 32], strides = [1, 1]} : vector<8x128xf32> to vector<8x32xf32>
    %88 = arith.mulf %85, %63 : vector<8x32xf32>
    %89 = arith.mulf %84, %86 : vector<8x32xf32>
    %90 = arith.addf %88, %89 : vector<8x32xf32>
    %91 = math.tanh %90 : vector<8x32xf32>
    %92 = arith.mulf %87, %91 : vector<8x32xf32>
    %93 = arith.index_cast %69 : i32 to index
    %c0_22 = arith.constant 0 : index
    %94 = vector.load %arg14[%93, %c0_22] : memref<64x32xf32, #tpu.memory_space<vmem>>, vector<8x32xf32>
    tpu.vector_store %arg14[%93, %c0_22], %92 {strides = array<i32>} : memref<64x32xf32, #tpu.memory_space<vmem>>, vector<8x32xf32>,
    %c3_i32 = arith.constant 3 : i32
    %c8_i32_23 = arith.constant 8 : i32
    %95 = arith.muli %c3_i32, %c8_i32_23 : i32
    %96 = tpu.assume_multiple %95, 8 : i32
    %97 = arith.index_cast %96 : i32 to index
    %c0_24 = arith.constant 0 : index
    %98 = vector.load %arg0[%97, %c0_24] : memref<64x128xf32, #tpu.memory_space<vmem>>, vector<8x128xf32>
    %cst_25 = arith.constant dense<0.000000e+00> : vector<8x128xf32>
    %99 = tpu.matmul %92, %13, %cst_25 {dimension_numbers = #tpu.dot_dimension_numbers<[1], [0], [0], [1], [0, 0, 1, 1], [], []>} : vector<8x32xf32>, vector<32x128xf32>, vector<8x128xf32> -> vector<8x128xf32>
    %100 = arith.addf %98, %99 : vector<8x128xf32>
    %101 = arith.negf %100 : vector<8x128xf32>
    %102 = math.exp %101 : vector<8x128xf32>
    %cst_26 = arith.constant 1.000000e+00 : f32
    %103 = vector.broadcast %cst_26 : f32 to vector<8x128xf32>
    %104 = arith.addf %103, %102 : vector<8x128xf32>
    %105 = arith.divf %103, %104 : vector<8x128xf32>
    %cst_27 = arith.constant 2.000000e+00 : f32
    %106 = vector.broadcast %cst_27 : f32 to vector<8x128xf32>
    %107 = arith.mulf %106, %105 : vector<8x128xf32>
    %cst_28 = arith.constant 1.000000e+00 : f32
    %108 = vector.broadcast %cst_28 : f32 to vector<8x128xf32>
    %109 = arith.subf %107, %108 : vector<8x128xf32>
    %110 = arith.select %5, %109, %105 : vector<8x128xi1>, vector<8x128xf32>
    %111 = vector.extract_strided_slice %110 {offsets = [0, 0], sizes = [8, 32], strides = [1, 1]} : vector<8x128xf32> to vector<8x32xf32>
    %112 = vector.extract_strided_slice %110 {offsets = [0, 32], sizes = [8, 32], strides = [1, 1]} : vector<8x128xf32> to vector<8x32xf32>
    %113 = vector.extract_strided_slice %110 {offsets = [0, 64], sizes = [8, 32], strides = [1, 1]} : vector<8x128xf32> to vector<8x32xf32>
    %114 = vector.extract_strided_slice %110 {offsets = [0, 96], sizes = [8, 32], strides = [1, 1]} : vector<8x128xf32> to vector<8x32xf32>
    %115 = arith.mulf %112, %90 : vector<8x32xf32>
    %116 = arith.mulf %111, %113 : vector<8x32xf32>
    %117 = arith.addf %115, %116 : vector<8x32xf32>
    %118 = math.tanh %117 : vector<8x32xf32>
    %119 = arith.mulf %114, %118 : vector<8x32xf32>
    %120 = arith.index_cast %96 : i32 to index
    %c0_29 = arith.constant 0 : index
    %121 = vector.load %arg14[%120, %c0_29] : memref<64x32xf32, #tpu.memory_space<vmem>>, vector<8x32xf32>
    tpu.vector_store %arg14[%120, %c0_29], %119 {strides = array<i32>} : memref<64x32xf32, #tpu.memory_space<vmem>>, vector<8x32xf32>,
    %c4_i32 = arith.constant 4 : i32
    %c8_i32_30 = arith.constant 8 : i32
    %122 = arith.muli %c4_i32, %c8_i32_30 : i32
    %123 = tpu.assume_multiple %122, 8 : i32
    %124 = arith.index_cast %123 : i32 to index
    %c0_31 = arith.constant 0 : index
    %125 = vector.load %arg0[%124, %c0_31] : memref<64x128xf32, #tpu.memory_space<vmem>>, vector<8x128xf32>
    %cst_32 = arith.constant dense<0.000000e+00> : vector<8x128xf32>
    %126 = tpu.matmul %119, %13, %cst_32 {dimension_numbers = #tpu.dot_dimension_numbers<[1], [0], [0], [1], [0, 0, 1, 1], [], []>} : vector<8x32xf32>, vector<32x128xf32>, vector<8x128xf32> -> vector<8x128xf32>
    %127 = arith.addf %125, %126 : vector<8x128xf32>
    %128 = arith.negf %127 : vector<8x128xf32>
    %129 = math.exp %128 : vector<8x128xf32>
    %cst_33 = arith.constant 1.000000e+00 : f32
    %130 = vector.broadcast %cst_33 : f32 to vector<8x128xf32>
    %131 = arith.addf %130, %129 : vector<8x128xf32>
    %132 = arith.divf %130, %131 : vector<8x128xf32>
    %cst_34 = arith.constant 2.000000e+00 : f32
    %133 = vector.broadcast %cst_34 : f32 to vector<8x128xf32>
    %134 = arith.mulf %133, %132 : vector<8x128xf32>
    %cst_35 = arith.constant 1.000000e+00 : f32
    %135 = vector.broadcast %cst_35 : f32 to vector<8x128xf32>
    %136 = arith.subf %134, %135 : vector<8x128xf32>
    %137 = arith.select %5, %136, %132 : vector<8x128xi1>, vector<8x128xf32>
    %138 = vector.extract_strided_slice %137 {offsets = [0, 0], sizes = [8, 32], strides = [1, 1]} : vector<8x128xf32> to vector<8x32xf32>
    %139 = vector.extract_strided_slice %137 {offsets = [0, 32], sizes = [8, 32], strides = [1, 1]} : vector<8x128xf32> to vector<8x32xf32>
    %140 = vector.extract_strided_slice %137 {offsets = [0, 64], sizes = [8, 32], strides = [1, 1]} : vector<8x128xf32> to vector<8x32xf32>
    %141 = vector.extract_strided_slice %137 {offsets = [0, 96], sizes = [8, 32], strides = [1, 1]} : vector<8x128xf32> to vector<8x32xf32>
    %142 = arith.mulf %139, %117 : vector<8x32xf32>
    %143 = arith.mulf %138, %140 : vector<8x32xf32>
    %144 = arith.addf %142, %143 : vector<8x32xf32>
    %145 = math.tanh %144 : vector<8x32xf32>
    %146 = arith.mulf %141, %145 : vector<8x32xf32>
    %147 = arith.index_cast %123 : i32 to index
    %c0_36 = arith.constant 0 : index
    %148 = vector.load %arg14[%147, %c0_36] : memref<64x32xf32, #tpu.memory_space<vmem>>, vector<8x32xf32>
    tpu.vector_store %arg14[%147, %c0_36], %146 {strides = array<i32>} : memref<64x32xf32, #tpu.memory_space<vmem>>, vector<8x32xf32>,
    %c5_i32 = arith.constant 5 : i32
    %c8_i32_37 = arith.constant 8 : i32
    %149 = arith.muli %c5_i32, %c8_i32_37 : i32
    %150 = tpu.assume_multiple %149, 8 : i32
    %151 = arith.index_cast %150 : i32 to index
    %c0_38 = arith.constant 0 : index
    %152 = vector.load %arg0[%151, %c0_38] : memref<64x128xf32, #tpu.memory_space<vmem>>, vector<8x128xf32>
    %cst_39 = arith.constant dense<0.000000e+00> : vector<8x128xf32>
    %153 = tpu.matmul %146, %13, %cst_39 {dimension_numbers = #tpu.dot_dimension_numbers<[1], [0], [0], [1], [0, 0, 1, 1], [], []>} : vector<8x32xf32>, vector<32x128xf32>, vector<8x128xf32> -> vector<8x128xf32>
    %154 = arith.addf %152, %153 : vector<8x128xf32>
    %155 = arith.negf %154 : vector<8x128xf32>
    %156 = math.exp %155 : vector<8x128xf32>
    %cst_40 = arith.constant 1.000000e+00 : f32
    %157 = vector.broadcast %cst_40 : f32 to vector<8x128xf32>
    %158 = arith.addf %157, %156 : vector<8x128xf32>
    %159 = arith.divf %157, %158 : vector<8x128xf32>
    %cst_41 = arith.constant 2.000000e+00 : f32
    %160 = vector.broadcast %cst_41 : f32 to vector<8x128xf32>
    %161 = arith.mulf %160, %159 : vector<8x128xf32>
    %cst_42 = arith.constant 1.000000e+00 : f32
    %162 = vector.broadcast %cst_42 : f32 to vector<8x128xf32>
    %163 = arith.subf %161, %162 : vector<8x128xf32>
    %164 = arith.select %5, %163, %159 : vector<8x128xi1>, vector<8x128xf32>
    %165 = vector.extract_strided_slice %164 {offsets = [0, 0], sizes = [8, 32], strides = [1, 1]} : vector<8x128xf32> to vector<8x32xf32>
    %166 = vector.extract_strided_slice %164 {offsets = [0, 32], sizes = [8, 32], strides = [1, 1]} : vector<8x128xf32> to vector<8x32xf32>
    %167 = vector.extract_strided_slice %164 {offsets = [0, 64], sizes = [8, 32], strides = [1, 1]} : vector<8x128xf32> to vector<8x32xf32>
    %168 = vector.extract_strided_slice %164 {offsets = [0, 96], sizes = [8, 32], strides = [1, 1]} : vector<8x128xf32> to vector<8x32xf32>
    %169 = arith.mulf %166, %144 : vector<8x32xf32>
    %170 = arith.mulf %165, %167 : vector<8x32xf32>
    %171 = arith.addf %169, %170 : vector<8x32xf32>
    %172 = math.tanh %171 : vector<8x32xf32>
    %173 = arith.mulf %168, %172 : vector<8x32xf32>
    %174 = arith.index_cast %150 : i32 to index
    %c0_43 = arith.constant 0 : index
    %175 = vector.load %arg14[%174, %c0_43] : memref<64x32xf32, #tpu.memory_space<vmem>>, vector<8x32xf32>
    tpu.vector_store %arg14[%174, %c0_43], %173 {strides = array<i32>} : memref<64x32xf32, #tpu.memory_space<vmem>>, vector<8x32xf32>,
    %c6_i32 = arith.constant 6 : i32
    %c8_i32_44 = arith.constant 8 : i32
    %176 = arith.muli %c6_i32, %c8_i32_44 : i32
    %177 = tpu.assume_multiple %176, 8 : i32
    %178 = arith.index_cast %177 : i32 to index
    %c0_45 = arith.constant 0 : index
    %179 = vector.load %arg0[%178, %c0_45] : memref<64x128xf32, #tpu.memory_space<vmem>>, vector<8x128xf32>
    %cst_46 = arith.constant dense<0.000000e+00> : vector<8x128xf32>
    %180 = tpu.matmul %173, %13, %cst_46 {dimension_numbers = #tpu.dot_dimension_numbers<[1], [0], [0], [1], [0, 0, 1, 1], [], []>} : vector<8x32xf32>, vector<32x128xf32>, vector<8x128xf32> -> vector<8x128xf32>
    %181 = arith.addf %179, %180 : vector<8x128xf32>
    %182 = arith.negf %181 : vector<8x128xf32>
    %183 = math.exp %182 : vector<8x128xf32>
    %cst_47 = arith.constant 1.000000e+00 : f32
    %184 = vector.broadcast %cst_47 : f32 to vector<8x128xf32>
    %185 = arith.addf %184, %183 : vector<8x128xf32>
    %186 = arith.divf %184, %185 : vector<8x128xf32>
    %cst_48 = arith.constant 2.000000e+00 : f32
    %187 = vector.broadcast %cst_48 : f32 to vector<8x128xf32>
    %188 = arith.mulf %187, %186 : vector<8x128xf32>
    %cst_49 = arith.constant 1.000000e+00 : f32
    %189 = vector.broadcast %cst_49 : f32 to vector<8x128xf32>
    %190 = arith.subf %188, %189 : vector<8x128xf32>
    %191 = arith.select %5, %190, %186 : vector<8x128xi1>, vector<8x128xf32>
    %192 = vector.extract_strided_slice %191 {offsets = [0, 0], sizes = [8, 32], strides = [1, 1]} : vector<8x128xf32> to vector<8x32xf32>
    %193 = vector.extract_strided_slice %191 {offsets = [0, 32], sizes = [8, 32], strides = [1, 1]} : vector<8x128xf32> to vector<8x32xf32>
    %194 = vector.extract_strided_slice %191 {offsets = [0, 64], sizes = [8, 32], strides = [1, 1]} : vector<8x128xf32> to vector<8x32xf32>
    %195 = vector.extract_strided_slice %191 {offsets = [0, 96], sizes = [8, 32], strides = [1, 1]} : vector<8x128xf32> to vector<8x32xf32>
    %196 = arith.mulf %193, %171 : vector<8x32xf32>
    %197 = arith.mulf %192, %194 : vector<8x32xf32>
    %198 = arith.addf %196, %197 : vector<8x32xf32>
    %199 = math.tanh %198 : vector<8x32xf32>
    %200 = arith.mulf %195, %199 : vector<8x32xf32>
    %201 = arith.index_cast %177 : i32 to index
    %c0_50 = arith.constant 0 : index
    %202 = vector.load %arg14[%201, %c0_50] : memref<64x32xf32, #tpu.memory_space<vmem>>, vector<8x32xf32>
    tpu.vector_store %arg14[%201, %c0_50], %200 {strides = array<i32>} : memref<64x32xf32, #tpu.memory_space<vmem>>, vector<8x32xf32>,
    %c7_i32 = arith.constant 7 : i32
    %c8_i32_51 = arith.constant 8 : i32
    %203 = arith.muli %c7_i32, %c8_i32_51 : i32
    %204 = tpu.assume_multiple %203, 8 : i32
    %205 = arith.index_cast %204 : i32 to index
    %c0_52 = arith.constant 0 : index
    %206 = vector.load %arg0[%205, %c0_52] : memref<64x128xf32, #tpu.memory_space<vmem>>, vector<8x128xf32>
    %cst_53 = arith.constant dense<0.000000e+00> : vector<8x128xf32>
    %207 = tpu.matmul %200, %13, %cst_53 {dimension_numbers = #tpu.dot_dimension_numbers<[1], [0], [0], [1], [0, 0, 1, 1], [], []>} : vector<8x32xf32>, vector<32x128xf32>, vector<8x128xf32> -> vector<8x128xf32>
    %208 = arith.addf %206, %207 : vector<8x128xf32>
    %209 = arith.negf %208 : vector<8x128xf32>
    %210 = math.exp %209 : vector<8x128xf32>
    %cst_54 = arith.constant 1.000000e+00 : f32
    %211 = vector.broadcast %cst_54 : f32 to vector<8x128xf32>
    %212 = arith.addf %211, %210 : vector<8x128xf32>
    %213 = arith.divf %211, %212 : vector<8x128xf32>
    %cst_55 = arith.constant 2.000000e+00 : f32
    %214 = vector.broadcast %cst_55 : f32 to vector<8x128xf32>
    %215 = arith.mulf %214, %213 : vector<8x128xf32>
    %cst_56 = arith.constant 1.000000e+00 : f32
    %216 = vector.broadcast %cst_56 : f32 to vector<8x128xf32>
    %217 = arith.subf %215, %216 : vector<8x128xf32>
    %218 = arith.select %5, %217, %213 : vector<8x128xi1>, vector<8x128xf32>
    %219 = vector.extract_strided_slice %218 {offsets = [0, 0], sizes = [8, 32], strides = [1, 1]} : vector<8x128xf32> to vector<8x32xf32>
    %220 = vector.extract_strided_slice %218 {offsets = [0, 32], sizes = [8, 32], strides = [1, 1]} : vector<8x128xf32> to vector<8x32xf32>
    %221 = vector.extract_strided_slice %218 {offsets = [0, 64], sizes = [8, 32], strides = [1, 1]} : vector<8x128xf32> to vector<8x32xf32>
    %222 = vector.extract_strided_slice %218 {offsets = [0, 96], sizes = [8, 32], strides = [1, 1]} : vector<8x128xf32> to vector<8x32xf32>
    %223 = arith.mulf %220, %198 : vector<8x32xf32>
    %224 = arith.mulf %219, %221 : vector<8x32xf32>
    %225 = arith.addf %223, %224 : vector<8x32xf32>
    %226 = math.tanh %225 : vector<8x32xf32>
    %227 = arith.mulf %222, %226 : vector<8x32xf32>
    %228 = arith.index_cast %204 : i32 to index
    %c0_57 = arith.constant 0 : index
    %229 = vector.load %arg14[%228, %c0_57] : memref<64x32xf32, #tpu.memory_space<vmem>>, vector<8x32xf32>
    tpu.vector_store %arg14[%228, %c0_57], %227 {strides = array<i32>} : memref<64x32xf32, #tpu.memory_space<vmem>>, vector<8x32xf32>,
    %c8_i32_58 = arith.constant 8 : i32
    %c0_59 = arith.constant 0 : index
    %c0_60 = arith.constant 0 : index
    %230 = vector.load %arg2[%c0_59, %c0_60] : memref<32x128xf32, #tpu.memory_space<vmem>>, vector<32x128xf32>
    %c0_61 = arith.constant 0 : index
    %c0_62 = arith.constant 0 : index
    %231 = vector.load %arg3[%c0_61, %c0_62] : memref<32x128xf32, #tpu.memory_space<vmem>>, vector<32x128xf32>
    %c0_63 = arith.constant 0 : index
    %c0_64 = arith.constant 0 : index
    %232 = vector.load %arg14[%c0_63, %c0_64] : memref<64x32xf32, #tpu.memory_space<vmem>>, vector<64x32xf32>
    %cst_65 = arith.constant dense<0.000000e+00> : vector<64x128xf32>
    %233 = tpu.matmul %232, %230, %cst_65 {dimension_numbers = #tpu.dot_dimension_numbers<[1], [0], [0], [1], [0, 0, 1, 1], [], []>} : vector<64x32xf32>, vector<32x128xf32>, vector<64x128xf32> -> vector<64x128xf32>
    %c0_66 = arith.constant 0 : index
    %c0_67 = arith.constant 0 : index
    %234 = vector.load %arg4[%c0_66, %c0_67] : memref<1x128xf32, #tpu.memory_space<vmem>>, vector<1x128xf32>
    %235 = vector.broadcast %234 : vector<1x128xf32> to vector<64x128xf32>
    %236 = arith.addf %233, %235 : vector<64x128xf32>
    %c0_68 = arith.constant 0 : index
    %c0_69 = arith.constant 0 : index
    %237 = vector.load %arg15[%c0_68, %c0_69] : memref<64x128xf32, #tpu.memory_space<vmem>>, vector<64x128xf32>
    tpu.vector_store %arg15[%c0_68, %c0_69], %236 {strides = array<i32>} : memref<64x128xf32, #tpu.memory_space<vmem>>, vector<64x128xf32>,
    %c0_i32_70 = arith.constant 0 : i32
    %c8_i32_71 = arith.constant 8 : i32
    %238 = arith.muli %c0_i32_70, %c8_i32_71 : i32
    %239 = tpu.assume_multiple %238, 8 : i32
    %240 = arith.index_cast %239 : i32 to index
    %c0_72 = arith.constant 0 : index
    %241 = vector.load %arg15[%240, %c0_72] : memref<64x128xf32, #tpu.memory_space<vmem>>, vector<8x128xf32>
    %cst_73 = arith.constant dense<0.000000e+00> : vector<8x128xf32>
    %242 = tpu.matmul %12, %231, %cst_73 {dimension_numbers = #tpu.dot_dimension_numbers<[1], [0], [0], [1], [0, 0, 1, 1], [], []>} : vector<8x32xf32>, vector<32x128xf32>, vector<8x128xf32> -> vector<8x128xf32>
    %243 = arith.addf %241, %242 : vector<8x128xf32>
    %244 = arith.negf %243 : vector<8x128xf32>
    %245 = math.exp %244 : vector<8x128xf32>
    %cst_74 = arith.constant 1.000000e+00 : f32
    %246 = vector.broadcast %cst_74 : f32 to vector<8x128xf32>
    %247 = arith.addf %246, %245 : vector<8x128xf32>
    %248 = arith.divf %246, %247 : vector<8x128xf32>
    %cst_75 = arith.constant 2.000000e+00 : f32
    %249 = vector.broadcast %cst_75 : f32 to vector<8x128xf32>
    %250 = arith.mulf %249, %248 : vector<8x128xf32>
    %cst_76 = arith.constant 1.000000e+00 : f32
    %251 = vector.broadcast %cst_76 : f32 to vector<8x128xf32>
    %252 = arith.subf %250, %251 : vector<8x128xf32>
    %253 = arith.select %5, %252, %248 : vector<8x128xi1>, vector<8x128xf32>
    %254 = vector.extract_strided_slice %253 {offsets = [0, 0], sizes = [8, 32], strides = [1, 1]} : vector<8x128xf32> to vector<8x32xf32>
    %255 = vector.extract_strided_slice %253 {offsets = [0, 32], sizes = [8, 32], strides = [1, 1]} : vector<8x128xf32> to vector<8x32xf32>
    %256 = vector.extract_strided_slice %253 {offsets = [0, 64], sizes = [8, 32], strides = [1, 1]} : vector<8x128xf32> to vector<8x32xf32>
    %257 = vector.extract_strided_slice %253 {offsets = [0, 96], sizes = [8, 32], strides = [1, 1]} : vector<8x128xf32> to vector<8x32xf32>
    %258 = arith.mulf %255, %12 : vector<8x32xf32>
    %259 = arith.mulf %254, %256 : vector<8x32xf32>
    %260 = arith.addf %258, %259 : vector<8x32xf32>
    %261 = math.tanh %260 : vector<8x32xf32>
    %262 = arith.mulf %257, %261 : vector<8x32xf32>
    %c1_i32_77 = arith.constant 1 : i32
    %c8_i32_78 = arith.constant 8 : i32
    %263 = arith.muli %c1_i32_77, %c8_i32_78 : i32
    %264 = tpu.assume_multiple %263, 8 : i32
    %265 = arith.index_cast %264 : i32 to index
    %c0_79 = arith.constant 0 : index
    %266 = vector.load %arg15[%265, %c0_79] : memref<64x128xf32, #tpu.memory_space<vmem>>, vector<8x128xf32>
    %cst_80 = arith.constant dense<0.000000e+00> : vector<8x128xf32>
    %267 = tpu.matmul %262, %231, %cst_80 {dimension_numbers = #tpu.dot_dimension_numbers<[1], [0], [0], [1], [0, 0, 1, 1], [], []>} : vector<8x32xf32>, vector<32x128xf32>, vector<8x128xf32> -> vector<8x128xf32>
    %268 = arith.addf %266, %267 : vector<8x128xf32>
    %269 = arith.negf %268 : vector<8x128xf32>
    %270 = math.exp %269 : vector<8x128xf32>
    %cst_81 = arith.constant 1.000000e+00 : f32
    %271 = vector.broadcast %cst_81 : f32 to vector<8x128xf32>
    %272 = arith.addf %271, %270 : vector<8x128xf32>
    %273 = arith.divf %271, %272 : vector<8x128xf32>
    %cst_82 = arith.constant 2.000000e+00 : f32
    %274 = vector.broadcast %cst_82 : f32 to vector<8x128xf32>
    %275 = arith.mulf %274, %273 : vector<8x128xf32>
    %cst_83 = arith.constant 1.000000e+00 : f32
    %276 = vector.broadcast %cst_83 : f32 to vector<8x128xf32>
    %277 = arith.subf %275, %276 : vector<8x128xf32>
    %278 = arith.select %5, %277, %273 : vector<8x128xi1>, vector<8x128xf32>
    %279 = vector.extract_strided_slice %278 {offsets = [0, 0], sizes = [8, 32], strides = [1, 1]} : vector<8x128xf32> to vector<8x32xf32>
    %280 = vector.extract_strided_slice %278 {offsets = [0, 32], sizes = [8, 32], strides = [1, 1]} : vector<8x128xf32> to vector<8x32xf32>
    %281 = vector.extract_strided_slice %278 {offsets = [0, 64], sizes = [8, 32], strides = [1, 1]} : vector<8x128xf32> to vector<8x32xf32>
    %282 = vector.extract_strided_slice %278 {offsets = [0, 96], sizes = [8, 32], strides = [1, 1]} : vector<8x128xf32> to vector<8x32xf32>
    %283 = arith.mulf %280, %260 : vector<8x32xf32>
    %284 = arith.mulf %279, %281 : vector<8x32xf32>
    %285 = arith.addf %283, %284 : vector<8x32xf32>
    %286 = math.tanh %285 : vector<8x32xf32>
    %287 = arith.mulf %282, %286 : vector<8x32xf32>
    %c2_i32_84 = arith.constant 2 : i32
    %c8_i32_85 = arith.constant 8 : i32
    %288 = arith.muli %c2_i32_84, %c8_i32_85 : i32
    %289 = tpu.assume_multiple %288, 8 : i32
    %290 = arith.index_cast %289 : i32 to index
    %c0_86 = arith.constant 0 : index
    %291 = vector.load %arg15[%290, %c0_86] : memref<64x128xf32, #tpu.memory_space<vmem>>, vector<8x128xf32>
    %cst_87 = arith.constant dense<0.000000e+00> : vector<8x128xf32>
    %292 = tpu.matmul %287, %231, %cst_87 {dimension_numbers = #tpu.dot_dimension_numbers<[1], [0], [0], [1], [0, 0, 1, 1], [], []>} : vector<8x32xf32>, vector<32x128xf32>, vector<8x128xf32> -> vector<8x128xf32>
    %293 = arith.addf %291, %292 : vector<8x128xf32>
    %294 = arith.negf %293 : vector<8x128xf32>
    %295 = math.exp %294 : vector<8x128xf32>
    %cst_88 = arith.constant 1.000000e+00 : f32
    %296 = vector.broadcast %cst_88 : f32 to vector<8x128xf32>
    %297 = arith.addf %296, %295 : vector<8x128xf32>
    %298 = arith.divf %296, %297 : vector<8x128xf32>
    %cst_89 = arith.constant 2.000000e+00 : f32
    %299 = vector.broadcast %cst_89 : f32 to vector<8x128xf32>
    %300 = arith.mulf %299, %298 : vector<8x128xf32>
    %cst_90 = arith.constant 1.000000e+00 : f32
    %301 = vector.broadcast %cst_90 : f32 to vector<8x128xf32>
    %302 = arith.subf %300, %301 : vector<8x128xf32>
    %303 = arith.select %5, %302, %298 : vector<8x128xi1>, vector<8x128xf32>
    %304 = vector.extract_strided_slice %303 {offsets = [0, 0], sizes = [8, 32], strides = [1, 1]} : vector<8x128xf32> to vector<8x32xf32>
    %305 = vector.extract_strided_slice %303 {offsets = [0, 32], sizes = [8, 32], strides = [1, 1]} : vector<8x128xf32> to vector<8x32xf32>
    %306 = vector.extract_strided_slice %303 {offsets = [0, 64], sizes = [8, 32], strides = [1, 1]} : vector<8x128xf32> to vector<8x32xf32>
    %307 = vector.extract_strided_slice %303 {offsets = [0, 96], sizes = [8, 32], strides = [1, 1]} : vector<8x128xf32> to vector<8x32xf32>
    %308 = arith.mulf %305, %285 : vector<8x32xf32>
    %309 = arith.mulf %304, %306 : vector<8x32xf32>
    %310 = arith.addf %308, %309 : vector<8x32xf32>
    %311 = math.tanh %310 : vector<8x32xf32>
    %312 = arith.mulf %307, %311 : vector<8x32xf32>
    %c3_i32_91 = arith.constant 3 : i32
    %c8_i32_92 = arith.constant 8 : i32
    %313 = arith.muli %c3_i32_91, %c8_i32_92 : i32
    %314 = tpu.assume_multiple %313, 8 : i32
    %315 = arith.index_cast %314 : i32 to index
    %c0_93 = arith.constant 0 : index
    %316 = vector.load %arg15[%315, %c0_93] : memref<64x128xf32, #tpu.memory_space<vmem>>, vector<8x128xf32>
    %cst_94 = arith.constant dense<0.000000e+00> : vector<8x128xf32>
    %317 = tpu.matmul %312, %231, %cst_94 {dimension_numbers = #tpu.dot_dimension_numbers<[1], [0], [0], [1], [0, 0, 1, 1], [], []>} : vector<8x32xf32>, vector<32x128xf32>, vector<8x128xf32> -> vector<8x128xf32>
    %318 = arith.addf %316, %317 : vector<8x128xf32>
    %319 = arith.negf %318 : vector<8x128xf32>
    %320 = math.exp %319 : vector<8x128xf32>
    %cst_95 = arith.constant 1.000000e+00 : f32
    %321 = vector.broadcast %cst_95 : f32 to vector<8x128xf32>
    %322 = arith.addf %321, %320 : vector<8x128xf32>
    %323 = arith.divf %321, %322 : vector<8x128xf32>
    %cst_96 = arith.constant 2.000000e+00 : f32
    %324 = vector.broadcast %cst_96 : f32 to vector<8x128xf32>
    %325 = arith.mulf %324, %323 : vector<8x128xf32>
    %cst_97 = arith.constant 1.000000e+00 : f32
    %326 = vector.broadcast %cst_97 : f32 to vector<8x128xf32>
    %327 = arith.subf %325, %326 : vector<8x128xf32>
    %328 = arith.select %5, %327, %323 : vector<8x128xi1>, vector<8x128xf32>
    %329 = vector.extract_strided_slice %328 {offsets = [0, 0], sizes = [8, 32], strides = [1, 1]} : vector<8x128xf32> to vector<8x32xf32>
    %330 = vector.extract_strided_slice %328 {offsets = [0, 32], sizes = [8, 32], strides = [1, 1]} : vector<8x128xf32> to vector<8x32xf32>
    %331 = vector.extract_strided_slice %328 {offsets = [0, 64], sizes = [8, 32], strides = [1, 1]} : vector<8x128xf32> to vector<8x32xf32>
    %332 = vector.extract_strided_slice %328 {offsets = [0, 96], sizes = [8, 32], strides = [1, 1]} : vector<8x128xf32> to vector<8x32xf32>
    %333 = arith.mulf %330, %310 : vector<8x32xf32>
    %334 = arith.mulf %329, %331 : vector<8x32xf32>
    %335 = arith.addf %333, %334 : vector<8x32xf32>
    %336 = math.tanh %335 : vector<8x32xf32>
    %337 = arith.mulf %332, %336 : vector<8x32xf32>
    %c4_i32_98 = arith.constant 4 : i32
    %c8_i32_99 = arith.constant 8 : i32
    %338 = arith.muli %c4_i32_98, %c8_i32_99 : i32
    %339 = tpu.assume_multiple %338, 8 : i32
    %340 = arith.index_cast %339 : i32 to index
    %c0_100 = arith.constant 0 : index
    %341 = vector.load %arg15[%340, %c0_100] : memref<64x128xf32, #tpu.memory_space<vmem>>, vector<8x128xf32>
    %cst_101 = arith.constant dense<0.000000e+00> : vector<8x128xf32>
    %342 = tpu.matmul %337, %231, %cst_101 {dimension_numbers = #tpu.dot_dimension_numbers<[1], [0], [0], [1], [0, 0, 1, 1], [], []>} : vector<8x32xf32>, vector<32x128xf32>, vector<8x128xf32> -> vector<8x128xf32>
    %343 = arith.addf %341, %342 : vector<8x128xf32>
    %344 = arith.negf %343 : vector<8x128xf32>
    %345 = math.exp %344 : vector<8x128xf32>
    %cst_102 = arith.constant 1.000000e+00 : f32
    %346 = vector.broadcast %cst_102 : f32 to vector<8x128xf32>
    %347 = arith.addf %346, %345 : vector<8x128xf32>
    %348 = arith.divf %346, %347 : vector<8x128xf32>
    %cst_103 = arith.constant 2.000000e+00 : f32
    %349 = vector.broadcast %cst_103 : f32 to vector<8x128xf32>
    %350 = arith.mulf %349, %348 : vector<8x128xf32>
    %cst_104 = arith.constant 1.000000e+00 : f32
    %351 = vector.broadcast %cst_104 : f32 to vector<8x128xf32>
    %352 = arith.subf %350, %351 : vector<8x128xf32>
    %353 = arith.select %5, %352, %348 : vector<8x128xi1>, vector<8x128xf32>
    %354 = vector.extract_strided_slice %353 {offsets = [0, 0], sizes = [8, 32], strides = [1, 1]} : vector<8x128xf32> to vector<8x32xf32>
    %355 = vector.extract_strided_slice %353 {offsets = [0, 32], sizes = [8, 32], strides = [1, 1]} : vector<8x128xf32> to vector<8x32xf32>
    %356 = vector.extract_strided_slice %353 {offsets = [0, 64], sizes = [8, 32], strides = [1, 1]} : vector<8x128xf32> to vector<8x32xf32>
    %357 = vector.extract_strided_slice %353 {offsets = [0, 96], sizes = [8, 32], strides = [1, 1]} : vector<8x128xf32> to vector<8x32xf32>
    %358 = arith.mulf %355, %335 : vector<8x32xf32>
    %359 = arith.mulf %354, %356 : vector<8x32xf32>
    %360 = arith.addf %358, %359 : vector<8x32xf32>
    %361 = math.tanh %360 : vector<8x32xf32>
    %362 = arith.mulf %357, %361 : vector<8x32xf32>
    %c5_i32_105 = arith.constant 5 : i32
    %c8_i32_106 = arith.constant 8 : i32
    %363 = arith.muli %c5_i32_105, %c8_i32_106 : i32
    %364 = tpu.assume_multiple %363, 8 : i32
    %365 = arith.index_cast %364 : i32 to index
    %c0_107 = arith.constant 0 : index
    %366 = vector.load %arg15[%365, %c0_107] : memref<64x128xf32, #tpu.memory_space<vmem>>, vector<8x128xf32>
    %cst_108 = arith.constant dense<0.000000e+00> : vector<8x128xf32>
    %367 = tpu.matmul %362, %231, %cst_108 {dimension_numbers = #tpu.dot_dimension_numbers<[1], [0], [0], [1], [0, 0, 1, 1], [], []>} : vector<8x32xf32>, vector<32x128xf32>, vector<8x128xf32> -> vector<8x128xf32>
    %368 = arith.addf %366, %367 : vector<8x128xf32>
    %369 = arith.negf %368 : vector<8x128xf32>
    %370 = math.exp %369 : vector<8x128xf32>
    %cst_109 = arith.constant 1.000000e+00 : f32
    %371 = vector.broadcast %cst_109 : f32 to vector<8x128xf32>
    %372 = arith.addf %371, %370 : vector<8x128xf32>
    %373 = arith.divf %371, %372 : vector<8x128xf32>
    %cst_110 = arith.constant 2.000000e+00 : f32
    %374 = vector.broadcast %cst_110 : f32 to vector<8x128xf32>
    %375 = arith.mulf %374, %373 : vector<8x128xf32>
    %cst_111 = arith.constant 1.000000e+00 : f32
    %376 = vector.broadcast %cst_111 : f32 to vector<8x128xf32>
    %377 = arith.subf %375, %376 : vector<8x128xf32>
    %378 = arith.select %5, %377, %373 : vector<8x128xi1>, vector<8x128xf32>
    %379 = vector.extract_strided_slice %378 {offsets = [0, 0], sizes = [8, 32], strides = [1, 1]} : vector<8x128xf32> to vector<8x32xf32>
    %380 = vector.extract_strided_slice %378 {offsets = [0, 32], sizes = [8, 32], strides = [1, 1]} : vector<8x128xf32> to vector<8x32xf32>
    %381 = vector.extract_strided_slice %378 {offsets = [0, 64], sizes = [8, 32], strides = [1, 1]} : vector<8x128xf32> to vector<8x32xf32>
    %382 = vector.extract_strided_slice %378 {offsets = [0, 96], sizes = [8, 32], strides = [1, 1]} : vector<8x128xf32> to vector<8x32xf32>
    %383 = arith.mulf %380, %360 : vector<8x32xf32>
    %384 = arith.mulf %379, %381 : vector<8x32xf32>
    %385 = arith.addf %383, %384 : vector<8x32xf32>
    %386 = math.tanh %385 : vector<8x32xf32>
    %387 = arith.mulf %382, %386 : vector<8x32xf32>
    %c6_i32_112 = arith.constant 6 : i32
    %c8_i32_113 = arith.constant 8 : i32
    %388 = arith.muli %c6_i32_112, %c8_i32_113 : i32
    %389 = tpu.assume_multiple %388, 8 : i32
    %390 = arith.index_cast %389 : i32 to index
    %c0_114 = arith.constant 0 : index
    %391 = vector.load %arg15[%390, %c0_114] : memref<64x128xf32, #tpu.memory_space<vmem>>, vector<8x128xf32>
    %cst_115 = arith.constant dense<0.000000e+00> : vector<8x128xf32>
    %392 = tpu.matmul %387, %231, %cst_115 {dimension_numbers = #tpu.dot_dimension_numbers<[1], [0], [0], [1], [0, 0, 1, 1], [], []>} : vector<8x32xf32>, vector<32x128xf32>, vector<8x128xf32> -> vector<8x128xf32>
    %393 = arith.addf %391, %392 : vector<8x128xf32>
    %394 = arith.negf %393 : vector<8x128xf32>
    %395 = math.exp %394 : vector<8x128xf32>
    %cst_116 = arith.constant 1.000000e+00 : f32
    %396 = vector.broadcast %cst_116 : f32 to vector<8x128xf32>
    %397 = arith.addf %396, %395 : vector<8x128xf32>
    %398 = arith.divf %396, %397 : vector<8x128xf32>
    %cst_117 = arith.constant 2.000000e+00 : f32
    %399 = vector.broadcast %cst_117 : f32 to vector<8x128xf32>
    %400 = arith.mulf %399, %398 : vector<8x128xf32>
    %cst_118 = arith.constant 1.000000e+00 : f32
    %401 = vector.broadcast %cst_118 : f32 to vector<8x128xf32>
    %402 = arith.subf %400, %401 : vector<8x128xf32>
    %403 = arith.select %5, %402, %398 : vector<8x128xi1>, vector<8x128xf32>
    %404 = vector.extract_strided_slice %403 {offsets = [0, 0], sizes = [8, 32], strides = [1, 1]} : vector<8x128xf32> to vector<8x32xf32>
    %405 = vector.extract_strided_slice %403 {offsets = [0, 32], sizes = [8, 32], strides = [1, 1]} : vector<8x128xf32> to vector<8x32xf32>
    %406 = vector.extract_strided_slice %403 {offsets = [0, 64], sizes = [8, 32], strides = [1, 1]} : vector<8x128xf32> to vector<8x32xf32>
    %407 = vector.extract_strided_slice %403 {offsets = [0, 96], sizes = [8, 32], strides = [1, 1]} : vector<8x128xf32> to vector<8x32xf32>
    %408 = arith.mulf %405, %385 : vector<8x32xf32>
    %409 = arith.mulf %404, %406 : vector<8x32xf32>
    %410 = arith.addf %408, %409 : vector<8x32xf32>
    %411 = math.tanh %410 : vector<8x32xf32>
    %412 = arith.mulf %407, %411 : vector<8x32xf32>
    %c7_i32_119 = arith.constant 7 : i32
    %c8_i32_120 = arith.constant 8 : i32
    %413 = arith.muli %c7_i32_119, %c8_i32_120 : i32
    %414 = tpu.assume_multiple %413, 8 : i32
    %415 = arith.index_cast %414 : i32 to index
    %c0_121 = arith.constant 0 : index
    %416 = vector.load %arg15[%415, %c0_121] : memref<64x128xf32, #tpu.memory_space<vmem>>, vector<8x128xf32>
    %cst_122 = arith.constant dense<0.000000e+00> : vector<8x128xf32>
    %417 = tpu.matmul %412, %231, %cst_122 {dimension_numbers = #tpu.dot_dimension_numbers<[1], [0], [0], [1], [0, 0, 1, 1], [], []>} : vector<8x32xf32>, vector<32x128xf32>, vector<8x128xf32> -> vector<8x128xf32>
    %418 = arith.addf %416, %417 : vector<8x128xf32>
    %419 = arith.negf %418 : vector<8x128xf32>
    %420 = math.exp %419 : vector<8x128xf32>
    %cst_123 = arith.constant 1.000000e+00 : f32
    %421 = vector.broadcast %cst_123 : f32 to vector<8x128xf32>
    %422 = arith.addf %421, %420 : vector<8x128xf32>
    %423 = arith.divf %421, %422 : vector<8x128xf32>
    %cst_124 = arith.constant 2.000000e+00 : f32
    %424 = vector.broadcast %cst_124 : f32 to vector<8x128xf32>
    %425 = arith.mulf %424, %423 : vector<8x128xf32>
    %cst_125 = arith.constant 1.000000e+00 : f32
    %426 = vector.broadcast %cst_125 : f32 to vector<8x128xf32>
    %427 = arith.subf %425, %426 : vector<8x128xf32>
    %428 = arith.select %5, %427, %423 : vector<8x128xi1>, vector<8x128xf32>
    %429 = vector.extract_strided_slice %428 {offsets = [0, 0], sizes = [8, 32], strides = [1, 1]} : vector<8x128xf32> to vector<8x32xf32>
    %430 = vector.extract_strided_slice %428 {offsets = [0, 32], sizes = [8, 32], strides = [1, 1]} : vector<8x128xf32> to vector<8x32xf32>
    %431 = vector.extract_strided_slice %428 {offsets = [0, 64], sizes = [8, 32], strides = [1, 1]} : vector<8x128xf32> to vector<8x32xf32>
    %432 = vector.extract_strided_slice %428 {offsets = [0, 96], sizes = [8, 32], strides = [1, 1]} : vector<8x128xf32> to vector<8x32xf32>
    %433 = arith.mulf %430, %410 : vector<8x32xf32>
    %434 = arith.mulf %429, %431 : vector<8x32xf32>
    %435 = arith.addf %433, %434 : vector<8x32xf32>
    %436 = math.tanh %435 : vector<8x32xf32>
    %437 = arith.mulf %432, %436 : vector<8x32xf32>
    %c8_i32_126 = arith.constant 8 : i32
    %438 = vector.extract_strided_slice %435 {offsets = [0, 0], sizes = [2, 32], strides = [1, 1]} : vector<8x32xf32> to vector<2x32xf32>
    %439 = vector.extract_strided_slice %435 {offsets = [2, 0], sizes = [2, 32], strides = [1, 1]} : vector<8x32xf32> to vector<2x32xf32>
    %c0_127 = arith.constant 0 : index
    %c0_128 = arith.constant 0 : index
    %440 = vector.load %arg5[%c0_127, %c0_128] : memref<32x128xf32, #tpu.memory_space<vmem>>, vector<32x128xf32>
    %c0_129 = arith.constant 0 : index
    %c0_130 = arith.constant 0 : index
    %441 = vector.load %arg6[%c0_129, %c0_130] : memref<32x128xf32, #tpu.memory_space<vmem>>, vector<32x128xf32>
    %c0_131 = arith.constant 0 : index
    %c0_132 = arith.constant 0 : index
    %442 = vector.load %arg7[%c0_131, %c0_132] : memref<1x128xf32, #tpu.memory_space<vmem>>, vector<1x128xf32>
    %cst_133 = arith.constant 0.000000e+00 : f32
    %443 = vector.broadcast %cst_133 : f32 to vector<2x32xf32>
    %cst_134 = arith.constant 0.000000e+00 : f32
    %444 = vector.broadcast %cst_134 : f32 to vector<2x32xf32>
    %cst_135 = arith.constant dense<0.000000e+00> : vector<2x128xf32>
    %445 = tpu.matmul %438, %440, %cst_135 {dimension_numbers = #tpu.dot_dimension_numbers<[1], [0], [0], [1], [0, 0, 1, 1], [], []>} : vector<2x32xf32>, vector<32x128xf32>, vector<2x128xf32> -> vector<2x128xf32>
    %cst_136 = arith.constant dense<0.000000e+00> : vector<2x128xf32>
    %446 = tpu.matmul %443, %441, %cst_136 {dimension_numbers = #tpu.dot_dimension_numbers<[1], [0], [0], [1], [0, 0, 1, 1], [], []>} : vector<2x32xf32>, vector<32x128xf32>, vector<2x128xf32> -> vector<2x128xf32>
    %447 = arith.addf %445, %446 : vector<2x128xf32>
    %448 = vector.broadcast %442 : vector<1x128xf32> to vector<2x128xf32>
    %449 = arith.addf %447, %448 : vector<2x128xf32>
    %450 = arith.negf %449 : vector<2x128xf32>
    %451 = math.exp %450 : vector<2x128xf32>
    %cst_137 = arith.constant 1.000000e+00 : f32
    %452 = vector.broadcast %cst_137 : f32 to vector<2x128xf32>
    %453 = arith.addf %452, %451 : vector<2x128xf32>
    %454 = arith.divf %452, %453 : vector<2x128xf32>
    %cst_138 = arith.constant 2.000000e+00 : f32
    %455 = vector.broadcast %cst_138 : f32 to vector<2x128xf32>
    %456 = arith.mulf %455, %454 : vector<2x128xf32>
    %cst_139 = arith.constant 1.000000e+00 : f32
    %457 = vector.broadcast %cst_139 : f32 to vector<2x128xf32>
    %458 = arith.subf %456, %457 : vector<2x128xf32>
    %459 = arith.select %11, %458, %454 : vector<2x128xi1>, vector<2x128xf32>
    %460 = vector.extract_strided_slice %459 {offsets = [0, 0], sizes = [2, 32], strides = [1, 1]} : vector<2x128xf32> to vector<2x32xf32>
    %461 = vector.extract_strided_slice %459 {offsets = [0, 32], sizes = [2, 32], strides = [1, 1]} : vector<2x128xf32> to vector<2x32xf32>
    %462 = vector.extract_strided_slice %459 {offsets = [0, 64], sizes = [2, 32], strides = [1, 1]} : vector<2x128xf32> to vector<2x32xf32>
    %463 = vector.extract_strided_slice %459 {offsets = [0, 96], sizes = [2, 32], strides = [1, 1]} : vector<2x128xf32> to vector<2x32xf32>
    %464 = arith.mulf %461, %444 : vector<2x32xf32>
    %465 = arith.mulf %460, %462 : vector<2x32xf32>
    %466 = arith.addf %464, %465 : vector<2x32xf32>
    %467 = math.tanh %466 : vector<2x32xf32>
    %468 = arith.mulf %463, %467 : vector<2x32xf32>
    %cst_140 = arith.constant dense<0.000000e+00> : vector<2x128xf32>
    %469 = tpu.matmul %439, %440, %cst_140 {dimension_numbers = #tpu.dot_dimension_numbers<[1], [0], [0], [1], [0, 0, 1, 1], [], []>} : vector<2x32xf32>, vector<32x128xf32>, vector<2x128xf32> -> vector<2x128xf32>
    %cst_141 = arith.constant dense<0.000000e+00> : vector<2x128xf32>
    %470 = tpu.matmul %468, %441, %cst_141 {dimension_numbers = #tpu.dot_dimension_numbers<[1], [0], [0], [1], [0, 0, 1, 1], [], []>} : vector<2x32xf32>, vector<32x128xf32>, vector<2x128xf32> -> vector<2x128xf32>
    %471 = arith.addf %469, %470 : vector<2x128xf32>
    %472 = vector.broadcast %442 : vector<1x128xf32> to vector<2x128xf32>
    %473 = arith.addf %471, %472 : vector<2x128xf32>
    %474 = arith.negf %473 : vector<2x128xf32>
    %475 = math.exp %474 : vector<2x128xf32>
    %cst_142 = arith.constant 1.000000e+00 : f32
    %476 = vector.broadcast %cst_142 : f32 to vector<2x128xf32>
    %477 = arith.addf %476, %475 : vector<2x128xf32>
    %478 = arith.divf %476, %477 : vector<2x128xf32>
    %cst_143 = arith.constant 2.000000e+00 : f32
    %479 = vector.broadcast %cst_143 : f32 to vector<2x128xf32>
    %480 = arith.mulf %479, %478 : vector<2x128xf32>
    %cst_144 = arith.constant 1.000000e+00 : f32
    %481 = vector.broadcast %cst_144 : f32 to vector<2x128xf32>
    %482 = arith.subf %480, %481 : vector<2x128xf32>
    %483 = arith.select %11, %482, %478 : vector<2x128xi1>, vector<2x128xf32>
    %484 = vector.extract_strided_slice %483 {offsets = [0, 0], sizes = [2, 32], strides = [1, 1]} : vector<2x128xf32> to vector<2x32xf32>
    %485 = vector.extract_strided_slice %483 {offsets = [0, 32], sizes = [2, 32], strides = [1, 1]} : vector<2x128xf32> to vector<2x32xf32>
    %486 = vector.extract_strided_slice %483 {offsets = [0, 64], sizes = [2, 32], strides = [1, 1]} : vector<2x128xf32> to vector<2x32xf32>
    %487 = vector.extract_strided_slice %483 {offsets = [0, 96], sizes = [2, 32], strides = [1, 1]} : vector<2x128xf32> to vector<2x32xf32>
    %488 = arith.mulf %485, %466 : vector<2x32xf32>
    %489 = arith.mulf %484, %486 : vector<2x32xf32>
    %490 = arith.addf %488, %489 : vector<2x32xf32>
    %491 = math.tanh %490 : vector<2x32xf32>
    %492 = arith.mulf %487, %491 : vector<2x32xf32>
    %c0_145 = arith.constant 0 : index
    %c0_146 = arith.constant 0 : index
    %493 = vector.load %arg8[%c0_145, %c0_146] : memref<32x128xf32, #tpu.memory_space<vmem>>, vector<32x128xf32>
    %c0_147 = arith.constant 0 : index
    %c0_148 = arith.constant 0 : index
    %494 = vector.load %arg9[%c0_147, %c0_148] : memref<32x128xf32, #tpu.memory_space<vmem>>, vector<32x128xf32>
    %c0_149 = arith.constant 0 : index
    %c0_150 = arith.constant 0 : index
    %495 = vector.load %arg10[%c0_149, %c0_150] : memref<1x128xf32, #tpu.memory_space<vmem>>, vector<1x128xf32>
    %cst_151 = arith.constant 0.000000e+00 : f32
    %496 = vector.broadcast %cst_151 : f32 to vector<2x32xf32>
    %cst_152 = arith.constant 0.000000e+00 : f32
    %497 = vector.broadcast %cst_152 : f32 to vector<2x32xf32>
    %cst_153 = arith.constant dense<0.000000e+00> : vector<2x128xf32>
    %498 = tpu.matmul %468, %493, %cst_153 {dimension_numbers = #tpu.dot_dimension_numbers<[1], [0], [0], [1], [0, 0, 1, 1], [], []>} : vector<2x32xf32>, vector<32x128xf32>, vector<2x128xf32> -> vector<2x128xf32>
    %cst_154 = arith.constant dense<0.000000e+00> : vector<2x128xf32>
    %499 = tpu.matmul %496, %494, %cst_154 {dimension_numbers = #tpu.dot_dimension_numbers<[1], [0], [0], [1], [0, 0, 1, 1], [], []>} : vector<2x32xf32>, vector<32x128xf32>, vector<2x128xf32> -> vector<2x128xf32>
    %500 = arith.addf %498, %499 : vector<2x128xf32>
    %501 = vector.broadcast %495 : vector<1x128xf32> to vector<2x128xf32>
    %502 = arith.addf %500, %501 : vector<2x128xf32>
    %503 = arith.negf %502 : vector<2x128xf32>
    %504 = math.exp %503 : vector<2x128xf32>
    %cst_155 = arith.constant 1.000000e+00 : f32
    %505 = vector.broadcast %cst_155 : f32 to vector<2x128xf32>
    %506 = arith.addf %505, %504 : vector<2x128xf32>
    %507 = arith.divf %505, %506 : vector<2x128xf32>
    %cst_156 = arith.constant 2.000000e+00 : f32
    %508 = vector.broadcast %cst_156 : f32 to vector<2x128xf32>
    %509 = arith.mulf %508, %507 : vector<2x128xf32>
    %cst_157 = arith.constant 1.000000e+00 : f32
    %510 = vector.broadcast %cst_157 : f32 to vector<2x128xf32>
    %511 = arith.subf %509, %510 : vector<2x128xf32>
    %512 = arith.select %11, %511, %507 : vector<2x128xi1>, vector<2x128xf32>
    %513 = vector.extract_strided_slice %512 {offsets = [0, 0], sizes = [2, 32], strides = [1, 1]} : vector<2x128xf32> to vector<2x32xf32>
    %514 = vector.extract_strided_slice %512 {offsets = [0, 32], sizes = [2, 32], strides = [1, 1]} : vector<2x128xf32> to vector<2x32xf32>
    %515 = vector.extract_strided_slice %512 {offsets = [0, 64], sizes = [2, 32], strides = [1, 1]} : vector<2x128xf32> to vector<2x32xf32>
    %516 = vector.extract_strided_slice %512 {offsets = [0, 96], sizes = [2, 32], strides = [1, 1]} : vector<2x128xf32> to vector<2x32xf32>
    %517 = arith.mulf %514, %497 : vector<2x32xf32>
    %518 = arith.mulf %513, %515 : vector<2x32xf32>
    %519 = arith.addf %517, %518 : vector<2x32xf32>
    %520 = math.tanh %519 : vector<2x32xf32>
    %521 = arith.mulf %516, %520 : vector<2x32xf32>
    %cst_158 = arith.constant dense<0.000000e+00> : vector<2x128xf32>
    %522 = tpu.matmul %492, %493, %cst_158 {dimension_numbers = #tpu.dot_dimension_numbers<[1], [0], [0], [1], [0, 0, 1, 1], [], []>} : vector<2x32xf32>, vector<32x128xf32>, vector<2x128xf32> -> vector<2x128xf32>
    %cst_159 = arith.constant dense<0.000000e+00> : vector<2x128xf32>
    %523 = tpu.matmul %521, %494, %cst_159 {dimension_numbers = #tpu.dot_dimension_numbers<[1], [0], [0], [1], [0, 0, 1, 1], [], []>} : vector<2x32xf32>, vector<32x128xf32>, vector<2x128xf32> -> vector<2x128xf32>
    %524 = arith.addf %522, %523 : vector<2x128xf32>
    %525 = vector.broadcast %495 : vector<1x128xf32> to vector<2x128xf32>
    %526 = arith.addf %524, %525 : vector<2x128xf32>
    %527 = arith.negf %526 : vector<2x128xf32>
    %528 = math.exp %527 : vector<2x128xf32>
    %cst_160 = arith.constant 1.000000e+00 : f32
    %529 = vector.broadcast %cst_160 : f32 to vector<2x128xf32>
    %530 = arith.addf %529, %528 : vector<2x128xf32>
    %531 = arith.divf %529, %530 : vector<2x128xf32>
    %cst_161 = arith.constant 2.000000e+00 : f32
    %532 = vector.broadcast %cst_161 : f32 to vector<2x128xf32>
    %533 = arith.mulf %532, %531 : vector<2x128xf32>
    %cst_162 = arith.constant 1.000000e+00 : f32
    %534 = vector.broadcast %cst_162 : f32 to vector<2x128xf32>
    %535 = arith.subf %533, %534 : vector<2x128xf32>
    %536 = arith.select %11, %535, %531 : vector<2x128xi1>, vector<2x128xf32>
    %537 = vector.extract_strided_slice %536 {offsets = [0, 0], sizes = [2, 32], strides = [1, 1]} : vector<2x128xf32> to vector<2x32xf32>
    %538 = vector.extract_strided_slice %536 {offsets = [0, 32], sizes = [2, 32], strides = [1, 1]} : vector<2x128xf32> to vector<2x32xf32>
    %539 = vector.extract_strided_slice %536 {offsets = [0, 64], sizes = [2, 32], strides = [1, 1]} : vector<2x128xf32> to vector<2x32xf32>
    %540 = arith.mulf %538, %519 : vector<2x32xf32>
    %541 = arith.mulf %537, %539 : vector<2x32xf32>
    %542 = arith.addf %540, %541 : vector<2x32xf32>
    %c0_163 = arith.constant 0 : index
    %c0_164 = arith.constant 0 : index
    %543 = vector.load %arg11[%c0_163, %c0_164] : memref<32x2xf32, #tpu.memory_space<vmem>>, vector<32x2xf32>
    %cst_165 = arith.constant dense<0.000000e+00> : vector<2x2xf32>
    %544 = tpu.matmul %542, %543, %cst_165 {dimension_numbers = #tpu.dot_dimension_numbers<[1], [0], [0], [1], [0, 0, 1, 1], [], []>} : vector<2x32xf32>, vector<32x2xf32>, vector<2x2xf32> -> vector<2x2xf32>
    %c0_166 = arith.constant 0 : index
    %c0_167 = arith.constant 0 : index
    %545 = vector.load %arg12[%c0_166, %c0_167] : memref<1x2xf32, #tpu.memory_space<vmem>>, vector<1x2xf32>
    %546 = vector.broadcast %545 : vector<1x2xf32> to vector<2x2xf32>
    %547 = arith.addf %544, %546 : vector<2x2xf32>
    %c0_168 = arith.constant 0 : index
    %c0_169 = arith.constant 0 : index
    %548 = vector.load %arg13[%c0_168, %c0_169] : memref<2x2xf32, #tpu.memory_space<vmem>>, vector<2x2xf32>
    tpu.vector_store %arg13[%c0_168, %c0_169], %547 {strides = array<i32>} : memref<2x2xf32, #tpu.memory_space<vmem>>, vector<2x2xf32>,
    return
  }
}

</mosaic_0001>

<bundles_post_ra>
// kernel: hier_rnn_forward.1
= control target key start
LH: loop header
LB: loop body
LE: loop exit
PB: predicated region body
PF: predicated region fallthrough
CT: control target
= control target key end

     0   :  { %s2335_s0 = inlined_call_operand.vmem [shape: f32[64,128], index: 0, kind: input, shape index: {}]   ;;  %s2336_s1 = inlined_call_operand.vmem [shape: f32[32,128], index: 1, kind: input, shape index: {}]   ;;  %s2337_s2 = inlined_call_operand.vmem [shape: f32[32,128], index: 2, kind: input, shape index: {}]   ;;  %s2338_s3 = inlined_call_operand.vmem [shape: f32[32,128], index: 3, kind: input, shape index: {}]   ;;  %s2339_s4 = inlined_call_operand.vmem [shape: f32[1,128], index: 4, kind: input, shape index: {}]   ;;  %s2340_s5 = inlined_call_operand.vmem [shape: f32[32,128], index: 5, kind: input, shape index: {}]   ;;  %s2341_s6 = inlined_call_operand.vmem [shape: f32[32,128], index: 6, kind: input, shape index: {}]   ;;  %s2342_s7 = inlined_call_operand.vmem [shape: f32[1,128], index: 7, kind: input, shape index: {}]   ;;  %s2343_s8 = inlined_call_operand.vmem [shape: f32[32,128], index: 8, kind: input, shape index: {}]   ;;  %s2344_s9 = inlined_call_operand.vmem [shape: f32[32,128], index: 9, kind: input, shape index: {}]   ;;  %s2345_s10 = inlined_call_operand.vmem [shape: f32[1,128], index: 10, kind: input, shape index: {}]   ;;  %s2346_s11 = inlined_call_operand.vmem [shape: f32[32,2], index: 11, kind: input, shape index: {}]   ;;  %s2347_s12 = inlined_call_operand.vmem [shape: f32[1,2], index: 12, kind: input, shape index: {}]   ;;  %s2348_s13 = inlined_call_operand.hbm [shape: f32[2,2], index: 13, kind: output, shape index: {}]  }
   0x1   :  { %v53_v0 = vld [vmem:[%s2336_s1 + $0x18] sm:$0xff]  ;;  %v52_v1 = vld [vmem:[%s2336_s1 + $0x10] sm:$0xff]  ;;  %v51_v2 = vld [vmem:[%s2336_s1 + $0x8] sm:$0xff] }
   0x2   :  { %71 = vmatpush.msra.mxu3 %v53_v0  ;;  %140 = vmatpush.msra.mxu1 %v53_v0 }
   0x3   :  { %210 = vmatpush.msra.mxu2 %v53_v0  ;;  %350 = vmatpush.msra.mxu0 %v53_v0 }
   0x4   :  { %72 = vmatpush.msra.mxu3 %v52_v1  ;;  %141 = vmatpush.msra.mxu1 %v52_v1 }
   0x5   :  { %18 = vsyncpa [#allocation5], 0  ;;  %v50_v3 = vld [vmem:[%s2336_s1] sm:$0xff]  ;;  %211 = vmatpush.msra.mxu2 %v52_v1  ;;  %351 = vmatpush.msra.mxu0 %v52_v1  ;;  %v1872_v4 = vmov 0.0   ;;  %v45_v13 = vlaneseq  ;;  %s1873_s17 = smov 64   ;;  %s1874_s18 = smov 32  }
   0x6   :  { %73 = vmatpush.msra.mxu3 %v51_v2  ;;  %142 = vmatpush.msra.mxu1 %v51_v2  ;;  %v54_v5 = vld [vmem:[%s2335_s0] sm:$0xff]  ;;  %vm55_vm7 = vcmask 261120   ;;  %v1647_v36 = vld [vmem:[%s2335_s0 + $0x8] sm:$0xff]  ;;  %s1876_s29 = smov [#allocation4]  }
   0x7   :  { %212 = vmatpush.msra.mxu2 %v51_v2  ;;  %352 = vmatpush.msra.mxu0 %v51_v2  ;;  %v46_v16 = vand.u32 127, %v45_v13  ;;  %v1595_v24 = vld [vmem:[%s2346_s11 + $0x8] sm:$0xff]  ;;  %s1634_s30 = sshll.u32 %s1876_s29, 4  ;;  %s1635_s30 = int_to_ptr.vmem [resolvable:$true] %s1634_s30 }
   0x8   :  { %74 = vmatpush.msra.mxu3 %v50_v3  ;;  %143 = vmatpush.msra.mxu1 %v50_v3 }
   0x9   :  { %75 = vmatmul.f32.vlgmr.msra.gmra.mxu3 %v1872_v4  ;;  %213 = vmatpush.msra.mxu2 %v50_v3  ;;  %vm47_vm3 = vcmp.ge.s32.totalorder %v46_v16, 64  ;;  %vm48_vm4 = vcmp.lt.s32.totalorder %v46_v16, 96 }
   0xa   :  { %280 = vmatpush.msrb.mxu3 %v53_v0  ;;  %353 = vmatpush.msra.mxu0 %v50_v3  ;;  %vm1963_vm6 = vmand %vm47_vm3, %vm48_vm4 }
   0xb   :  { %420 = vmatpush.msrb.mxu1 %v53_v0  ;;  %490 = vmatpush.msrb.mxu2 %v53_v0 }
   0xc   :  { %281 = vmatpush.msrb.mxu3 %v52_v1 }
   0xd   :  { %421 = vmatpush.msrb.mxu1 %v52_v1  ;;  %491 = vmatpush.msrb.mxu2 %v52_v1 }
   0xe   :  { %282 = vmatpush.msrb.mxu3 %v51_v2 }
   0xf   :  { %422 = vmatpush.msrb.mxu1 %v51_v2  ;;  %492 = vmatpush.msrb.mxu2 %v51_v2 }
  0x10   :  { %283 = vmatpush.msrb.mxu3 %v50_v3 }
  0x11   :  { %423 = vmatpush.msrb.mxu1 %v50_v3  ;;  %493 = vmatpush.msrb.mxu2 %v50_v3 }
  0x12   :  { %560 = vmatpush.msra.mxu3 %v53_v0  ;;  %v1651_v0 = vld [vmem:[%s2335_s0 + $0x10] sm:$0xff] }
  0x14   :  { %561 = vmatpush.msra.mxu3 %v52_v1 }
  0x16   :  { %562 = vmatpush.msra.mxu3 %v51_v2 }
  0x18   :  { %563 = vmatpush.msra.mxu3 %v50_v3 }
  0x8c   :  { %v76_v6 = vpop.f32.mrf.mxu3 }
  0x8d   :  { %v79_v7 = vadd.f32 %v76_v6, %v54_v5 }
  0x8f   :  { %v1645_v8 = vmul.f32 -1.442695, %v79_v7 }
  0x91   :  { %1730 = vpow2.f32 %v1645_v8 }
  0x97   :  { %v1731_v9 = vpop.eup %1730 }
  0x98   :  { %v83_v10 = vadd.f32 1.0, %v1731_v9 }
  0x9a   :  { %1732 = vrcp.f32 %v83_v10  ;;  %v95_v15 = vand.u32 2147483648, %v83_v10  ;;  %v93_v18 = vand.u32 2147483647, %v83_v10  ;;  %vm89_vm1 = vweird.f32 %v83_v10 }
  0x9c   :  { %v96_v20 = vor.u32 1.1754944e-38, %v95_v15  ;;  %vm94_vm5 = vcmp.eq.f32.partialorder %v93_v18, 8.507059e+37 }
  0xa0   :  { %v1733_v11 = vpop.eup %1732 }
  0xa1   :  { %v85_v12 = vmul.f32 %v1733_v11, %v83_v10  ;;  %vm90_vm0 = vweird.f32 %v1733_v11 }
  0xa2   :  { %vm91_vm2 = vmor %vm89_vm1, %vm90_vm0 }
  0xa3   :  { %v86_v14 = vsub.f32 1.0, %v85_v12 }
  0xa5   :  { %v87_v17 = vmul.f32 %v1733_v11, %v86_v14 }
  0xa7   :  { %v88_v19 = vadd.f32 %v1733_v11, %v87_v17 }
  0xa9   :  { %v92_v21 = vsel %vm91_vm2, %v1733_v11, %v88_v19 }
  0xaa   :  { %v97_v22 = vsel %vm94_vm5, %v96_v20, %v92_v21 }
  0xab   :  { %v99_v23 = vmul.f32 2.0, %v97_v22 }
  0xad   :  { %v1646_v25 = vadd.f32 -1.0, %v99_v23 }
  0xaf   :  { %v101_v26 = vsel %vm1963_vm6, %v1646_v25, %v97_v22 }
  0xb0   :  { %104 = vrot.lane.b32.xlu0 %v101_v26, %s1873_s17  ;;  %v102_v29 = vmul.f32 0.0, %v101_v26 }
 0x122   :  { %v105_v27 = vpop.permute.xlu0 %104 }
 0x123   :  { %v107_v28 = vmul.f32 %v105_v27, %v101_v26 }
 0x125   :  { %109 = vrot.lane.b32.xlu0 %v107_v28, %s1874_s18 }
 0x197   :  { %v110_v30 = vpop.permute.xlu0 %109 }
 0x198   :  { %v112_v31 = vadd.f32 %v110_v30, %v102_v29  ;;  %v1655_v30 = vld [vmem:[%s2335_s0 + $0x18] sm:$0xff] }
 0x19a   :  { %1734 = vtanh.f32 %v112_v31 }
 0x1a0   :  { %v1735_v32 = vpop.eup %1734 }
 0x1a1   :  { %115 = vrot.lane.b32.xlu1 %v1735_v32, %s1873_s17 }
 0x213   :  { %v116_v33 = vpop.permute.xlu1 %115 }
 0x214   :  { %v118_v34 = vmul.f32 %v116_v33, %v101_v26 }
 0x216   :  { %120 = vrot.lane.b32.xlu1 %v118_v34, %s1874_s18 }
 0x288   :  { %v121_v35 = vpop.permute.xlu1 %120 }
 0x289   :  { %123 = vst.msk [vmem:[#allocation2] sm:$0xff] %vm55_vm7, %v121_v35  ;;  %1648 = vmatmul.msk.f32.vlgmr.msra.gmra.mxu1 %vm55_vm7, %v121_v35 }
 0x306   :  { %v145_v37 = vpop.f32.mrf.mxu1 }
 0x307   :  { %v148_v38 = vadd.f32 %v1647_v36, %v145_v37 }
 0x309   :  { %v1649_v39 = vmul.f32 -1.442695, %v148_v38 }
 0x30b   :  { %1736 = vpow2.f32 %v1649_v39 }
 0x311   :  { %v1737_v40 = vpop.eup %1736 }
 0x312   :  { %v152_v41 = vadd.f32 1.0, %v1737_v40 }
 0x314   :  { %1738 = vrcp.f32 %v152_v41  ;;  %v164_v45 = vand.u32 2147483648, %v152_v41  ;;  %v162_v47 = vand.u32 2147483647, %v152_v41  ;;  %vm158_vm9 = vweird.f32 %v152_v41 }
 0x316   :  { %v165_v49 = vor.u32 1.1754944e-38, %v164_v45  ;;  %vm163_vm11 = vcmp.eq.f32.partialorder %v162_v47, 8.507059e+37 }
 0x31a   :  { %v1739_v42 = vpop.eup %1738 }
 0x31b   :  { %v154_v43 = vmul.f32 %v1739_v42, %v152_v41  ;;  %vm159_vm8 = vweird.f32 %v1739_v42 }
 0x31c   :  { %vm160_vm10 = vmor %vm158_vm9, %vm159_vm8 }
 0x31d   :  { %v155_v44 = vsub.f32 1.0, %v154_v43 }
 0x31f   :  { %v156_v46 = vmul.f32 %v1739_v42, %v155_v44 }
 0x321   :  { %v157_v48 = vadd.f32 %v1739_v42, %v156_v46 }
 0x323   :  { %v161_v50 = vsel %vm160_vm10, %v1739_v42, %v157_v48 }
 0x324   :  { %v166_v51 = vsel %vm163_vm11, %v165_v49, %v161_v50 }
 0x325   :  { %v168_v52 = vmul.f32 2.0, %v166_v51 }
 0x327   :  { %v1650_v53 = vadd.f32 -1.0, %v168_v52 }
 0x329   :  { %v170_v54 = vsel %vm1963_vm6, %v1650_v53, %v166_v51 }
 0x32a   :  { %173 = vrot.lane.b32.xlu2 %v170_v54, %s1873_s17  ;;  %v171_v57 = vmul.f32 %v170_v54, %v112_v31 }
 0x384   :  { %v174_v55 = vpop.permute.xlu2 %173 }
 0x385   :  { %v176_v56 = vmul.f32 %v174_v55, %v170_v54 }
 0x387   :  { %178 = vrot.lane.b32.xlu2 %v176_v56, %s1874_s18 }
 0x3e1   :  { %v179_v58 = vpop.permute.xlu2 %178 }
 0x3e2   :  { %v181_v59 = vadd.f32 %v179_v58, %v171_v57  ;;  %v617_v57 = vld [vmem:[%s2337_s2 + $0x18] sm:$0xff]  ;;  %v616_v58 = vld [vmem:[%s2337_s2 + $0x10] sm:$0xff] }
 0x3e3   :  { %670 = vmatpush.msrb.mxu0 %v617_v57 }
 0x3e4   :  { %1740 = vtanh.f32 %v181_v59 }
 0x3e5   :  { %671 = vmatpush.msrb.mxu0 %v616_v58 }
 0x3ea   :  { %v1741_v60 = vpop.eup %1740 }
 0x3eb   :  { %184 = vrot.lane.b32.xlu0 %v1741_v60, %s1873_s17  ;;  %v614_v60 = vld [vmem:[%s2337_s2] sm:$0xff] }
 0x45d   :  { %v185_v61 = vpop.permute.xlu0 %184 }
 0x45e   :  { %v187_v62 = vmul.f32 %v185_v61, %v170_v54 }
 0x460   :  { %189 = vrot.lane.b32.xlu1 %v187_v62, %s1874_s18  ;;  %v622_v62 = vld [vmem:[#allocation2] sm:$0xff] }
 0x4d2   :  { %v190_v63 = vpop.permute.xlu1 %189 }
 0x4d3   :  { %193 = vst.msk [vmem:[#allocation2 + $0x8] sm:$0xff] %vm55_vm7, %v190_v63  ;;  %1652 = vmatmul.msk.f32.vlgmr.msra.gmra.mxu2 %vm55_vm7, %v190_v63 }
 0x4da   :  { %v623_v63 = vld [vmem:[#allocation2 + $0x8] sm:$0xff] }
 0x556   :  { %v215_v1 = vpop.f32.mrf.mxu2 }
 0x557   :  { %v218_v2 = vadd.f32 %v1651_v0, %v215_v1 }
 0x559   :  { %v1653_v3 = vmul.f32 -1.442695, %v218_v2  ;;  %v1659_v2 = vld [vmem:[%s2335_s0 + $0x20] sm:$0xff] }
 0x55b   :  { %1742 = vpow2.f32 %v1653_v3 }
 0x561   :  { %v1743_v5 = vpop.eup %1742 }
 0x562   :  { %v222_v6 = vadd.f32 1.0, %v1743_v5 }
 0x564   :  { %1744 = vrcp.f32 %v222_v6  ;;  %v234_v10 = vand.u32 2147483648, %v222_v6  ;;  %v232_v12 = vand.u32 2147483647, %v222_v6  ;;  %vm228_vm13 = vweird.f32 %v222_v6 }
 0x566   :  { %v235_v14 = vor.u32 1.1754944e-38, %v234_v10  ;;  %vm233_vm15 = vcmp.eq.f32.partialorder %v232_v12, 8.507059e+37 }
 0x56a   :  { %v1745_v7 = vpop.eup %1744 }
 0x56b   :  { %v224_v8 = vmul.f32 %v1745_v7, %v222_v6  ;;  %vm229_vm12 = vweird.f32 %v1745_v7 }
 0x56c   :  { %vm230_vm14 = vmor %vm228_vm13, %vm229_vm12 }
 0x56d   :  { %v225_v9 = vsub.f32 1.0, %v224_v8 }
 0x56f   :  { %v226_v11 = vmul.f32 %v1745_v7, %v225_v9 }
 0x571   :  { %v227_v13 = vadd.f32 %v1745_v7, %v226_v11 }
 0x573   :  { %v231_v15 = vsel %vm230_vm14, %v1745_v7, %v227_v13 }
 0x574   :  { %v236_v16 = vsel %vm233_vm15, %v235_v14, %v231_v15 }
 0x575   :  { %v238_v17 = vmul.f32 2.0, %v236_v16 }
 0x577   :  { %v1654_v18 = vadd.f32 -1.0, %v238_v17 }
 0x579   :  { %v240_v19 = vsel %vm1963_vm6, %v1654_v18, %v236_v16 }
 0x57a   :  { %243 = vrot.lane.b32.xlu2 %v240_v19, %s1873_s17  ;;  %v241_v22 = vmul.f32 %v240_v19, %v181_v59  ;;  %v615_v59 = vld [vmem:[%s2337_s2 + $0x8] sm:$0xff] }
 0x57b   :  { %672 = vmatpush.msrb.mxu0 %v615_v59 }
 0x57d   :  { %673 = vmatpush.msrb.mxu0 %v614_v60 }
 0x5d4   :  { %v244_v20 = vpop.permute.xlu2 %243 }
 0x5d5   :  { %v246_v21 = vmul.f32 %v244_v20, %v240_v19 }
 0x5d7   :  { %248 = vrot.lane.b32.xlu0 %v246_v21, %s1874_s18 }
 0x649   :  { %v249_v23 = vpop.permute.xlu0 %248 }
 0x64a   :  { %v251_v25 = vadd.f32 %v249_v23, %v241_v22 }
 0x64c   :  { %1746 = vtanh.f32 %v251_v25 }
 0x652   :  { %v1747_v26 = vpop.eup %1746 }
 0x653   :  { %254 = vrot.lane.b32.xlu1 %v1747_v26, %s1873_s17 }
 0x6c5   :  { %v255_v27 = vpop.permute.xlu1 %254 }
 0x6c6   :  { %v257_v28 = vmul.f32 %v255_v27, %v240_v19 }
 0x6c8   :  { %259 = vrot.lane.b32.xlu2 %v257_v28, %s1874_s18 }
 0x722   :  { %v260_v29 = vpop.permute.xlu2 %259 }
 0x723   :  { %263 = vst.msk [vmem:[#allocation2 + $0x10] sm:$0xff] %vm55_vm7, %v260_v29  ;;  %1656 = vmatmul.msk.f32.vlgmr.msrb.gmra.mxu3 %vm55_vm7, %v260_v29 }
 0x72a   :  { %v624_v0 = vld [vmem:[#allocation2 + $0x10] sm:$0xff] }
 0x7a6   :  { %v285_v31 = vpop.f32.mrf.mxu3 }
 0x7a7   :  { %v288_v32 = vadd.f32 %v1655_v30, %v285_v31  ;;  %v2039_v31 = vld [vmem:[%s2338_s3 + $0x18] sm:$0xff] }
 0x7a8   :  { %720 = vmatpush.msra.mxu1 %v2039_v31  ;;  %787 = vmatpush.msra.mxu2 %v2039_v31 }
 0x7a9   :  { %v1657_v33 = vmul.f32 -1.442695, %v288_v32  ;;  %v2044_v32 = vld [vmem:[%s2338_s3 + $0x10] sm:$0xff]  ;;  %854 = vmatpush.msrb.mxu3 %v2039_v31 }
 0x7aa   :  { %721 = vmatpush.msra.mxu1 %v2044_v32  ;;  %788 = vmatpush.msra.mxu2 %v2044_v32 }
 0x7ab   :  { %1748 = vpow2.f32 %v1657_v33  ;;  %v2051_v33 = vld [vmem:[%s2338_s3 + $0x8] sm:$0xff]  ;;  %855 = vmatpush.msrb.mxu3 %v2044_v32 }
 0x7ac   :  { %722 = vmatpush.msra.mxu1 %v2051_v33  ;;  %789 = vmatpush.msra.mxu2 %v2051_v33 }
 0x7ad   :  { %856 = vmatpush.msrb.mxu3 %v2051_v33 }
 0x7b1   :  { %v1749_v34 = vpop.eup %1748 }
 0x7b2   :  { %v292_v35 = vadd.f32 1.0, %v1749_v34  ;;  %v2059_v34 = vld [vmem:[%s2338_s3] sm:$0xff] }
 0x7b3   :  { %723 = vmatpush.msra.mxu1 %v2059_v34  ;;  %790 = vmatpush.msra.mxu2 %v2059_v34 }
 0x7b4   :  { %1750 = vrcp.f32 %v292_v35  ;;  %v304_v39 = vand.u32 2147483648, %v292_v35  ;;  %v302_v41 = vand.u32 2147483647, %v292_v35  ;;  %vm298_vm1 = vweird.f32 %v292_v35  ;;  %857 = vmatpush.msrb.mxu3 %v2059_v34 }
 0x7b6   :  { %v305_v43 = vor.u32 1.1754944e-38, %v304_v39  ;;  %vm303_vm3 = vcmp.eq.f32.partialorder %v302_v41, 8.507059e+37 }
 0x7ba   :  { %v1751_v36 = vpop.eup %1750 }
 0x7bb   :  { %v294_v37 = vmul.f32 %v1751_v36, %v292_v35  ;;  %vm299_vm0 = vweird.f32 %v1751_v36 }
 0x7bc   :  { %vm300_vm2 = vmor %vm298_vm1, %vm299_vm0 }
 0x7bd   :  { %v295_v38 = vsub.f32 1.0, %v294_v37  ;;  %v1663_v37 = vld [vmem:[%s2335_s0 + $0x28] sm:$0xff] }
 0x7bf   :  { %v296_v40 = vmul.f32 %v1751_v36, %v295_v38 }
 0x7c1   :  { %v297_v42 = vadd.f32 %v1751_v36, %v296_v40  ;;  %v2086_v40 = vld [vmem:[%s2339_s4] ss:$0 sm:$0xff] }
 0x7c3   :  { %v301_v44 = vsel %vm300_vm2, %v1751_v36, %v297_v42 }
 0x7c4   :  { %v306_v45 = vsel %vm303_vm3, %v305_v43, %v301_v44 }
 0x7c5   :  { %v308_v46 = vmul.f32 2.0, %v306_v45 }
 0x7c7   :  { %v1658_v47 = vadd.f32 -1.0, %v308_v46 }
 0x7c9   :  { %v310_v48 = vsel %vm1963_vm6, %v1658_v47, %v306_v45 }
 0x7ca   :  { %313 = vrot.lane.b32.xlu0 %v310_v48, %s1873_s17  ;;  %v311_v51 = vmul.f32 %v310_v48, %v251_v25 }
 0x83c   :  { %v314_v49 = vpop.permute.xlu0 %313 }
 0x83d   :  { %v316_v50 = vmul.f32 %v314_v49, %v310_v48 }
 0x83f   :  { %318 = vrot.lane.b32.xlu1 %v316_v50, %s1874_s18 }
 0x8b1   :  { %v319_v52 = vpop.permute.xlu1 %318 }
 0x8b2   :  { %v321_v53 = vadd.f32 %v319_v52, %v311_v51 }
 0x8b4   :  { %1752 = vtanh.f32 %v321_v53 }
 0x8ba   :  { %v1753_v54 = vpop.eup %1752 }
 0x8bb   :  { %324 = vrot.lane.b32.xlu2 %v1753_v54, %s1873_s17 }
 0x915   :  { %v325_v55 = vpop.permute.xlu2 %324 }
 0x916   :  { %v327_v56 = vmul.f32 %v325_v55, %v310_v48 }
 0x918   :  { %329 = vrot.lane.b32.xlu0 %v327_v56, %s1874_s18 }
 0x98a   :  { %v330_v61 = vpop.permute.xlu0 %329 }
 0x98b   :  { %333 = vst.msk [vmem:[#allocation2 + $0x18] sm:$0xff] %vm55_vm7, %v330_v61  ;;  %1660 = vmatmul.msk.f32.vlgmr.msra.gmra.mxu0 %vm55_vm7, %v330_v61 }
 0x992   :  { %v625_v1 = vld [vmem:[#allocation2 + $0x18] sm:$0xff] }
 0x993   :  { %1675 = vmatmul.msk.f32.vlgmr.msrb.gmra.mxu0 %vm55_vm7, %v622_v62 }
 0x99b   :  { %1676 = vmatmul.msk.f32.gmra.mxu0 %vm55_vm7, %v623_v63 }
 0x9a3   :  { %1677 = vmatmul.msk.f32.gmra.mxu0 %vm55_vm7, %v624_v0 }
 0x9ab   :  { %1678 = vmatmul.msk.f32.gmra.mxu0 %vm55_vm7, %v625_v1 }
 0xa08   :  { %v355_v3 = vpop.f32.mrf.mxu0 }
 0xa09   :  { %v358_v5 = vadd.f32 %v1659_v2, %v355_v3 }
 0xa0b   :  { %v1661_v6 = vmul.f32 -1.442695, %v358_v5 }
 0xa0d   :  { %1754 = vpow2.f32 %v1661_v6 }
 0xa10   :  { %v675_v42 = vpop.f32.mrf.mxu0 }
 0xa11   :  { %v676_v43 = vadd.f32 %v2086_v40, %v675_v42 }
 0xa13   :  { %v1755_v7 = vpop.eup %1754 }
 0xa14   :  { %v362_v8 = vadd.f32 1.0, %v1755_v7 }
 0xa16   :  { %1756 = vrcp.f32 %v362_v8  ;;  %v374_v12 = vand.u32 2147483648, %v362_v8  ;;  %v372_v14 = vand.u32 2147483647, %v362_v8  ;;  %vm368_vm5 = vweird.f32 %v362_v8 }
 0xa18   :  { %v375_v16 = vor.u32 1.1754944e-38, %v374_v12  ;;  %vm373_vm9 = vcmp.eq.f32.partialorder %v372_v14, 8.507059e+37 }
 0xa1c   :  { %v1757_v9 = vpop.eup %1756 }
 0xa1d   :  { %v364_v10 = vmul.f32 %v1757_v9, %v362_v8  ;;  %vm369_vm4 = vweird.f32 %v1757_v9 }
 0xa1e   :  { %vm370_vm8 = vmor %vm368_vm5, %vm369_vm4 }
 0xa1f   :  { %v365_v11 = vsub.f32 1.0, %v364_v10 }
 0xa21   :  { %v366_v13 = vmul.f32 %v1757_v9, %v365_v11 }
 0xa23   :  { %v367_v15 = vadd.f32 %v1757_v9, %v366_v13 }
 0xa25   :  { %v371_v17 = vsel %vm370_vm8, %v1757_v9, %v367_v15 }
 0xa26   :  { %v376_v18 = vsel %vm373_vm9, %v375_v16, %v371_v17 }
 0xa27   :  { %v378_v19 = vmul.f32 2.0, %v376_v18 }
 0xa29   :  { %v1662_v20 = vadd.f32 -1.0, %v378_v19 }
 0xa2b   :  { %v380_v21 = vsel %vm1963_vm6, %v1662_v20, %v376_v18 }
 0xa2c   :  { %383 = vrot.lane.b32.xlu1 %v380_v21, %s1873_s17  ;;  %v381_v25 = vmul.f32 %v380_v21, %v321_v53 }
 0xa9e   :  { %v384_v22 = vpop.permute.xlu1 %383 }
 0xa9f   :  { %v386_v23 = vmul.f32 %v384_v22, %v380_v21 }
 0xaa1   :  { %388 = vrot.lane.b32.xlu2 %v386_v23, %s1874_s18 }
 0xafb   :  { %v389_v26 = vpop.permute.xlu2 %388 }
 0xafc   :  { %v2031_v27 = vadd.f32 %v389_v26, %v381_v25 }
 0xafe   :  { %1758 = vtanh.f32 %v2031_v27 }
 0xb04   :  { %v1759_v28 = vpop.eup %1758 }
 0xb05   :  { %394 = vrot.lane.b32.xlu0 %v1759_v28, %s1873_s17 }
 0xb77   :  { %v395_v29 = vpop.permute.xlu0 %394 }
 0xb78   :  { %v397_v30 = vmul.f32 %v395_v29, %v380_v21 }
 0xb7a   :  { %399 = vrot.lane.b32.xlu1 %v397_v30, %s1874_s18 }
 0xbec   :  { %v400_v35 = vpop.permute.xlu1 %399 }
 0xbed   :  { %403 = vst.msk [vmem:[#allocation2 + $0x20] sm:$0xff] %vm55_vm7, %v400_v35  ;;  %1664 = vmatmul.msk.f32.vlgmr.msrb.gmra.mxu1 %vm55_vm7, %v400_v35 }
 0xbee   :  { %921 = vmatpush.msrb.mxu1 %v2039_v31 }
 0xbf0   :  { %922 = vmatpush.msrb.mxu1 %v2044_v32 }
 0xbf2   :  { %923 = vmatpush.msrb.mxu1 %v2051_v33 }
 0xbf4   :  { %v626_v36 = vld [vmem:[#allocation2 + $0x20] sm:$0xff]  ;;  %924 = vmatpush.msrb.mxu1 %v2059_v34 }
 0xbf5   :  { %1679 = vmatmul.msk.f32.gmra.mxu0 %vm55_vm7, %v626_v36  ;;  %724 = vmatmul.f32.vlgmr.msra.gmra.mxu1 %v1872_v4 }
 0xbf6   :  { %1122 = vmatpush.msra.mxu1 %v2039_v31 }
 0xbf8   :  { %1123 = vmatpush.msra.mxu1 %v2044_v32 }
 0xbfa   :  { %1124 = vmatpush.msra.mxu1 %v2051_v33 }
 0xbfc   :  { %1125 = vmatpush.msra.mxu1 %v2059_v34 }
 0xc6a   :  { %v425_v38 = vpop.f32.mrf.mxu1 }
 0xc6b   :  { %v428_v39 = vadd.f32 %v1663_v37, %v425_v38  ;;  %v1667_v38 = vld [vmem:[%s2335_s0 + $0x30] sm:$0xff] }
 0xc6d   :  { %v1665_v41 = vmul.f32 -1.442695, %v428_v39 }
 0xc6f   :  { %1760 = vpow2.f32 %v1665_v41 }
 0xc72   :  { %v725_v44 = vpop.f32.mrf.mxu1 }
 0xc73   :  { %v728_v45 = vadd.f32 %v725_v44, %v676_v43 }
 0xc75   :  { %v1761_v46 = vpop.eup %1760  ;;  %v1683_v47 = vmul.f32 -1.442695, %v728_v45 }
 0xc76   :  { %v432_v48 = vadd.f32 1.0, %v1761_v46 }
 0xc77   :  { %1762 = vpow2.f32 %v1683_v47 }
 0xc78   :  { %1764 = vrcp.f32 %v432_v48  ;;  %v444_v54 = vand.u32 2147483648, %v432_v48  ;;  %v442_v56 = vand.u32 2147483647, %v432_v48  ;;  %vm438_vm11 = vweird.f32 %v432_v48 }
 0xc7a   :  { %v445_v59 = vor.u32 1.1754944e-38, %v444_v54  ;;  %vm443_vm13 = vcmp.eq.f32.partialorder %v442_v56, 8.507059e+37 }
 0xc7d   :  { %v1763_v49 = vpop.eup %1762 }
 0xc7e   :  { %v1765_v50 = vpop.eup %1764  ;;  %v732_v51 = vadd.f32 1.0, %v1763_v49 }
 0xc7f   :  { %v434_v52 = vmul.f32 %v1765_v50, %v432_v48  ;;  %vm439_vm10 = vweird.f32 %v1765_v50 }
 0xc80   :  { %1766 = vrcp.f32 %v732_v51  ;;  %vm440_vm12 = vmor %vm438_vm11, %vm439_vm10  ;;  %v744_v1 = vand.u32 2147483648, %v732_v51  ;;  %v742_v5 = vand.u32 2147483647, %v732_v51  ;;  %vm738_vm15 = vweird.f32 %v732_v51 }
 0xc81   :  { %v435_v53 = vsub.f32 1.0, %v434_v52  ;;  %v678_v52 = vpop.f32.mrf.mxu0 }
 0xc82   :  { %v745_v8 = vor.u32 1.1754944e-38, %v744_v1  ;;  %vm743_vm1 = vcmp.eq.f32.partialorder %v742_v5, 8.507059e+37  ;;  %v679_v56 = vadd.f32 %v2086_v40, %v678_v52 }
 0xc83   :  { %v436_v55 = vmul.f32 %v1765_v50, %v435_v53 }
 0xc85   :  { %v437_v57 = vadd.f32 %v1765_v50, %v436_v55 }
 0xc86   :  { %v1767_v58 = vpop.eup %1766 }
 0xc87   :  { %v734_v60 = vmul.f32 %v1767_v58, %v732_v51  ;;  %v441_v61 = vsel %vm440_vm12, %v1765_v50, %v437_v57  ;;  %vm739_vm14 = vweird.f32 %v1767_v58 }
 0xc88   :  { %v446_v62 = vsel %vm443_vm13, %v445_v59, %v441_v61  ;;  %vm740_vm0 = vmor %vm738_vm15, %vm739_vm14 }
 0xc89   :  { %v735_v63 = vsub.f32 1.0, %v734_v60  ;;  %v448_v0 = vmul.f32 2.0, %v446_v62 }
 0xc8b   :  { %v1666_v2 = vadd.f32 -1.0, %v448_v0  ;;  %v736_v3 = vmul.f32 %v1767_v58, %v735_v63 }
 0xc8d   :  { %v450_v6 = vsel %vm1963_vm6, %v1666_v2, %v446_v62  ;;  %v737_v7 = vadd.f32 %v1767_v58, %v736_v3 }
 0xc8e   :  { %453 = vrot.lane.b32.xlu2 %v450_v6, %s1873_s17  ;;  %v451_v18 = vmul.f32 %v450_v6, %v2031_v27 }
 0xc8f   :  { %v741_v9 = vsel %vm740_vm0, %v1767_v58, %v737_v7 }
 0xc90   :  { %v746_v10 = vsel %vm743_vm1, %v745_v8, %v741_v9 }
 0xc91   :  { %v748_v11 = vmul.f32 2.0, %v746_v10 }
 0xc93   :  { %v1684_v12 = vadd.f32 -1.0, %v748_v11 }
 0xc95   :  { %v750_v13 = vsel %vm1963_vm6, %v1684_v12, %v746_v10 }
 0xc96   :  { %753 = vrot.lane.b32.xlu0 %v750_v13, %s1873_s17  ;;  %v751_v21 = vmul.f32 0.0, %v750_v13 }
 0xce8   :  { %v454_v14 = vpop.permute.xlu2 %453 }
 0xce9   :  { %v456_v15 = vmul.f32 %v454_v14, %v450_v6 }
 0xceb   :  { %458 = vrot.lane.b32.xlu1 %v456_v15, %s1874_s18 }
 0xd08   :  { %v754_v16 = vpop.permute.xlu0 %753 }
 0xd09   :  { %v756_v17 = vmul.f32 %v754_v16, %v750_v13 }
 0xd0b   :  { %758 = vrot.lane.b32.xlu2 %v756_v17, %s1874_s18 }
 0xd5d   :  { %v459_v19 = vpop.permute.xlu1 %458 }
 0xd5e   :  { %v2098_v20 = vadd.f32 %v459_v19, %v451_v18 }
 0xd60   :  { %1768 = vtanh.f32 %v2098_v20 }
 0xd65   :  { %v759_v22 = vpop.permute.xlu2 %758 }
 0xd66   :  { %v1769_v23 = vpop.eup %1768  ;;  %v2101_v25 = vadd.f32 %v759_v22, %v751_v21 }
 0xd67   :  { %464 = vrot.lane.b32.xlu0 %v1769_v23, %s1873_s17 }
 0xd68   :  { %1770 = vtanh.f32 %v2101_v25 }
 0xd6e   :  { %v1771_v26 = vpop.eup %1770 }
 0xd6f   :  { %764 = vrot.lane.b32.xlu1 %v1771_v26, %s1873_s17 }
 0xdd9   :  { %v465_v28 = vpop.permute.xlu0 %464 }
 0xdda   :  { %v467_v29 = vmul.f32 %v465_v28, %v450_v6 }
 0xddc   :  { %469 = vrot.lane.b32.xlu2 %v467_v29, %s1874_s18 }
 0xde1   :  { %v765_v27 = vpop.permute.xlu1 %764 }
 0xde2   :  { %v767_v30 = vmul.f32 %v765_v27, %v750_v13 }
 0xde4   :  { %771 = vrot.lane.b32.xlu0 %v767_v30, %s1874_s18 }
 0xe36   :  { %v470_v35 = vpop.permute.xlu2 %469 }
 0xe37   :  { %473 = vst.msk [vmem:[#allocation2 + $0x28] sm:$0xff] %vm55_vm7, %v470_v35  ;;  %1668 = vmatmul.msk.f32.vlgmr.msrb.gmra.mxu2 %vm55_vm7, %v470_v35 }
 0xe38   :  { %988 = vmatpush.msrb.mxu2 %v2039_v31 }
 0xe3a   :  { %989 = vmatpush.msrb.mxu2 %v2044_v32 }
 0xe3c   :  { %990 = vmatpush.msrb.mxu2 %v2051_v33 }
 0xe3e   :  { %v627_v36 = vld [vmem:[#allocation2 + $0x28] sm:$0xff]  ;;  %991 = vmatpush.msrb.mxu2 %v2059_v34 }
 0xe3f   :  { %1680 = vmatmul.msk.f32.gmra.mxu0 %vm55_vm7, %v627_v36 }
 0xe56   :  { %v772_v37 = vpop.permute.xlu0 %771 }
 0xe57   :  { %1685 = vmatmul.msk.f32.vlgmr.msra.gmra.mxu2 %vm55_vm7, %v772_v37 }
 0xe58   :  { %1189 = vmatpush.msra.mxu2 %v2039_v31 }
 0xe5a   :  { %1190 = vmatpush.msra.mxu2 %v2044_v32 }
 0xe5c   :  { %1191 = vmatpush.msra.mxu2 %v2051_v33 }
 0xe5e   :  { %1192 = vmatpush.msra.mxu2 %v2059_v34 }
 0xeba   :  { %v495_v39 = vpop.f32.mrf.mxu2 }
 0xebb   :  { %v498_v41 = vadd.f32 %v1667_v38, %v495_v39 }
 0xebd   :  { %v1669_v42 = vmul.f32 -1.442695, %v498_v41  ;;  %v681_v41 = vpop.f32.mrf.mxu0 }
 0xebf   :  { %1772 = vpow2.f32 %v1669_v42  ;;  %v682_v42 = vadd.f32 %v2086_v40, %v681_v41 }
 0xec5   :  { %v1773_v43 = vpop.eup %1772 }
 0xec6   :  { %v502_v44 = vadd.f32 1.0, %v1773_v43 }
 0xec8   :  { %1774 = vrcp.f32 %v502_v44  ;;  %v514_v48 = vand.u32 2147483648, %v502_v44  ;;  %v512_v50 = vand.u32 2147483647, %v502_v44  ;;  %vm508_vm3 = vweird.f32 %v502_v44 }
 0xeca   :  { %v515_v53 = vor.u32 1.1754944e-38, %v514_v48  ;;  %vm513_vm5 = vcmp.eq.f32.partialorder %v512_v50, 8.507059e+37 }
 0xece   :  { %v1775_v45 = vpop.eup %1774 }
 0xecf   :  { %v504_v46 = vmul.f32 %v1775_v45, %v502_v44  ;;  %vm509_vm2 = vweird.f32 %v1775_v45 }
 0xed0   :  { %vm510_vm4 = vmor %vm508_vm3, %vm509_vm2 }
 0xed1   :  { %v505_v47 = vsub.f32 1.0, %v504_v46 }
 0xed3   :  { %v506_v49 = vmul.f32 %v1775_v45, %v505_v47 }
 0xed5   :  { %v507_v51 = vadd.f32 %v1775_v45, %v506_v49 }
 0xed7   :  { %v511_v54 = vsel %vm510_vm4, %v1775_v45, %v507_v51 }
 0xed8   :  { %v516_v55 = vsel %vm513_vm5, %v515_v53, %v511_v54 }
 0xed9   :  { %v518_v57 = vmul.f32 2.0, %v516_v55 }
 0xeda   :  { %v792_v58 = vpop.f32.mrf.mxu2 }
 0xedb   :  { %v795_v59 = vadd.f32 %v792_v58, %v679_v56  ;;  %v1670_v60 = vadd.f32 -1.0, %v518_v57 }
 0xedd   :  { %v1686_v61 = vmul.f32 -1.442695, %v795_v59  ;;  %v520_v62 = vsel %vm1963_vm6, %v1670_v60, %v516_v55 }
 0xede   :  { %523 = vrot.lane.b32.xlu1 %v520_v62, %s1873_s17  ;;  %v521_v19 = vmul.f32 %v520_v62, %v2098_v20 }
 0xedf   :  { %1776 = vpow2.f32 %v1686_v61 }
 0xee5   :  { %v1777_v63 = vpop.eup %1776 }
 0xee6   :  { %v799_v0 = vadd.f32 1.0, %v1777_v63 }
 0xee8   :  { %1778 = vrcp.f32 %v799_v0  ;;  %v811_v5 = vand.u32 2147483648, %v799_v0  ;;  %v809_v7 = vand.u32 2147483647, %v799_v0  ;;  %vm805_vm9 = vweird.f32 %v799_v0 }
 0xeea   :  { %v812_v9 = vor.u32 1.1754944e-38, %v811_v5  ;;  %vm810_vm11 = vcmp.eq.f32.partialorder %v809_v7, 8.507059e+37 }
 0xeee   :  { %v1779_v1 = vpop.eup %1778 }
 0xeef   :  { %v801_v2 = vmul.f32 %v1779_v1, %v799_v0  ;;  %vm806_vm8 = vweird.f32 %v1779_v1 }
 0xef0   :  { %vm807_vm10 = vmor %vm805_vm9, %vm806_vm8 }
 0xef1   :  { %v802_v3 = vsub.f32 1.0, %v801_v2  ;;  %v684_v2 = vpop.f32.mrf.mxu0 }
 0xef3   :  { %v803_v6 = vmul.f32 %v1779_v1, %v802_v3  ;;  %v685_v3 = vadd.f32 %v2086_v40, %v684_v2 }
 0xef5   :  { %v804_v8 = vadd.f32 %v1779_v1, %v803_v6 }
 0xef7   :  { %v808_v10 = vsel %vm807_vm10, %v1779_v1, %v804_v8 }
 0xef8   :  { %v813_v11 = vsel %vm810_vm11, %v812_v9, %v808_v10 }
 0xef9   :  { %v815_v12 = vmul.f32 2.0, %v813_v11 }
 0xefb   :  { %v1687_v13 = vadd.f32 -1.0, %v815_v12 }
 0xefd   :  { %v817_v14 = vsel %vm1963_vm6, %v1687_v13, %v813_v11 }
 0xefe   :  { %820 = vrot.lane.b32.xlu2 %v817_v14, %s1873_s17  ;;  %v818_v23 = vmul.f32 %v817_v14, %v2101_v25 }
 0xf50   :  { %v524_v15 = vpop.permute.xlu1 %523 }
 0xf51   :  { %v526_v16 = vmul.f32 %v524_v15, %v520_v62 }
 0xf53   :  { %528 = vrot.lane.b32.xlu0 %v526_v16, %s1874_s18 }
 0xf58   :  { %v821_v17 = vpop.permute.xlu2 %820 }
 0xf59   :  { %v823_v18 = vmul.f32 %v821_v17, %v817_v14 }
 0xf5b   :  { %825 = vrot.lane.b32.xlu1 %v823_v18, %s1874_s18 }
 0xfc5   :  { %v529_v21 = vpop.permute.xlu0 %528 }
 0xfc6   :  { %v2133_v22 = vadd.f32 %v529_v21, %v521_v19 }
 0xfc8   :  { %1780 = vtanh.f32 %v2133_v22 }
 0xfcd   :  { %v826_v26 = vpop.permute.xlu1 %825 }
 0xfce   :  { %v1781_v28 = vpop.eup %1780  ;;  %v828_v29 = vadd.f32 %v826_v26, %v818_v23 }
 0xfcf   :  { %534 = vrot.lane.b32.xlu2 %v1781_v28, %s1873_s17 }
 0xfd0   :  { %1782 = vtanh.f32 %v828_v29 }
 0xfd6   :  { %v1783_v27 = vpop.eup %1782 }
 0xfd7   :  { %831 = vrot.lane.b32.xlu0 %v1783_v27, %s1873_s17 }
0x1029   :  { %v535_v30 = vpop.permute.xlu2 %534 }
0x102a   :  { %v537_v35 = vmul.f32 %v535_v30, %v520_v62 }
0x102c   :  { %539 = vrot.lane.b32.xlu1 %v537_v35, %s1874_s18 }
0x1049   :  { %v832_v20 = vpop.permute.xlu0 %831 }
0x104a   :  { %v834_v36 = vmul.f32 %v832_v20, %v817_v14 }
0x104c   :  { %838 = vrot.lane.b32.xlu2 %v834_v36, %s1874_s18 }
0x109e   :  { %v540_v37 = vpop.permute.xlu1 %539 }
0x109f   :  { %543 = vst.msk [vmem:[#allocation2 + $0x30] sm:$0xff] %vm55_vm7, %v540_v37  ;;  %1672 = vmatmul.msk.f32.vlgmr.msra.gmra.mxu3 %vm55_vm7, %v540_v37 }
0x10a0   :  { %1055 = vmatpush.msra.mxu3 %v2039_v31 }
0x10a2   :  { %1056 = vmatpush.msra.mxu3 %v2044_v32 }
0x10a4   :  { %1057 = vmatpush.msra.mxu3 %v2051_v33 }
0x10a6   :  { %v839_v25 = vpop.permute.xlu2 %838  ;;  %v628_v38 = vld [vmem:[#allocation2 + $0x30] sm:$0xff]  ;;  %1058 = vmatpush.msra.mxu3 %v2059_v34 }
0x10a7   :  { %1681 = vmatmul.msk.f32.gmra.mxu0 %vm55_vm7, %v628_v38  ;;  %1688 = vmatmul.msk.f32.vlgmr.msrb.gmra.mxu3 %vm55_vm7, %v839_v25  ;;  %v687_v38 = vpop.f32.mrf.mxu0 }
0x10a8   :  { %v688_v41 = vadd.f32 %v2086_v40, %v687_v38 }
0x1122   :  { %v2149_v39 = vpop.f32.mrf.mxu3 }
0x112a   :  { %v859_v43 = vpop.f32.mrf.mxu3 }
0x112b   :  { %v862_v44 = vadd.f32 %v859_v43, %v682_v42 }
0x112d   :  { %v1689_v31 = vmul.f32 -1.442695, %v862_v44 }
0x112f   :  { %1784 = vpow2.f32 %v1689_v31 }
0x1135   :  { %v1785_v32 = vpop.eup %1784 }
0x1136   :  { %v866_v45 = vadd.f32 1.0, %v1785_v32 }
0x1138   :  { %1786 = vrcp.f32 %v866_v45  ;;  %v878_v34 = vand.u32 2147483648, %v866_v45  ;;  %v876_v49 = vand.u32 2147483647, %v866_v45  ;;  %vm872_vm13 = vweird.f32 %v866_v45 }
0x113a   :  { %v879_v51 = vor.u32 1.1754944e-38, %v878_v34  ;;  %vm877_vm15 = vcmp.eq.f32.partialorder %v876_v49, 8.507059e+37 }
0x113e   :  { %v1787_v33 = vpop.eup %1786 }
0x113f   :  { %v868_v46 = vmul.f32 %v1787_v33, %v866_v45  ;;  %vm873_vm12 = vweird.f32 %v1787_v33 }
0x1140   :  { %vm874_vm14 = vmor %vm872_vm13, %vm873_vm12 }
0x1141   :  { %v869_v47 = vsub.f32 1.0, %v868_v46 }
0x1143   :  { %v870_v48 = vmul.f32 %v1787_v33, %v869_v47 }
0x1145   :  { %v871_v50 = vadd.f32 %v1787_v33, %v870_v48 }
0x1147   :  { %v875_v52 = vsel %vm874_vm14, %v1787_v33, %v871_v50 }
0x1148   :  { %v880_v53 = vsel %vm877_vm15, %v879_v51, %v875_v52 }
0x1149   :  { %v882_v54 = vmul.f32 2.0, %v880_v53 }
0x114b   :  { %v1690_v55 = vadd.f32 -1.0, %v882_v54 }
0x114d   :  { %v884_v56 = vsel %vm1963_vm6, %v1690_v55, %v880_v53 }
0x114e   :  { %887 = vrot.lane.b32.xlu0 %v884_v56, %s1873_s17  ;;  %v885_v59 = vmul.f32 %v884_v56, %v828_v29 }
0x11c0   :  { %v888_v57 = vpop.permute.xlu0 %887 }
0x11c1   :  { %v890_v58 = vmul.f32 %v888_v57, %v884_v56 }
0x11c3   :  { %892 = vrot.lane.b32.xlu1 %v890_v58, %s1874_s18 }
0x1235   :  { %v893_v60 = vpop.permute.xlu1 %892 }
0x1236   :  { %v895_v61 = vadd.f32 %v893_v60, %v885_v59 }
0x1238   :  { %1788 = vtanh.f32 %v895_v61 }
0x123e   :  { %v1789_v62 = vpop.eup %1788 }
0x123f   :  { %898 = vrot.lane.b32.xlu2 %v1789_v62, %s1873_s17 }
0x1299   :  { %v899_v63 = vpop.permute.xlu2 %898 }
0x129a   :  { %v901_v0 = vmul.f32 %v899_v63, %v884_v56 }
0x129c   :  { %905 = vrot.lane.b32.xlu0 %v901_v0, %s1874_s18 }
0x130e   :  { %v906_v1 = vpop.permute.xlu0 %905 }
0x130f   :  { %1691 = vmatmul.msk.f32.vlgmr.msrb.gmra.mxu1 %vm55_vm7, %v906_v1  ;;  %v690_v1 = vpop.f32.mrf.mxu0 }
0x1310   :  { %v691_v2 = vadd.f32 %v2086_v40, %v690_v1 }
0x138c   :  { %v926_v5 = vpop.f32.mrf.mxu1 }
0x138d   :  { %v929_v6 = vadd.f32 %v926_v5, %v685_v3 }
0x138f   :  { %v1692_v7 = vmul.f32 -1.442695, %v929_v6 }
0x1391   :  { %1790 = vpow2.f32 %v1692_v7 }
0x1397   :  { %v1791_v8 = vpop.eup %1790 }
0x1398   :  { %v933_v9 = vadd.f32 1.0, %v1791_v8 }
0x139a   :  { %1792 = vrcp.f32 %v933_v9  ;;  %v945_v13 = vand.u32 2147483648, %v933_v9  ;;  %v943_v15 = vand.u32 2147483647, %v933_v9  ;;  %vm939_vm1 = vweird.f32 %v933_v9 }
0x139c   :  { %v946_v17 = vor.u32 1.1754944e-38, %v945_v13  ;;  %vm944_vm3 = vcmp.eq.f32.partialorder %v943_v15, 8.507059e+37 }
0x13a0   :  { %v1793_v10 = vpop.eup %1792 }
0x13a1   :  { %v935_v11 = vmul.f32 %v1793_v10, %v933_v9  ;;  %vm940_vm0 = vweird.f32 %v1793_v10 }
0x13a2   :  { %vm941_vm2 = vmor %vm939_vm1, %vm940_vm0 }
0x13a3   :  { %v936_v12 = vsub.f32 1.0, %v935_v11 }
0x13a5   :  { %v937_v14 = vmul.f32 %v1793_v10, %v936_v12 }
0x13a7   :  { %v938_v16 = vadd.f32 %v1793_v10, %v937_v14 }
0x13a9   :  { %v942_v18 = vsel %vm941_vm2, %v1793_v10, %v938_v16 }
0x13aa   :  { %v947_v19 = vsel %vm944_vm3, %v946_v17, %v942_v18 }
0x13ab   :  { %v949_v21 = vmul.f32 2.0, %v947_v19 }
0x13ad   :  { %v1693_v23 = vadd.f32 -1.0, %v949_v21 }
0x13af   :  { %v951_v26 = vsel %vm1963_vm6, %v1693_v23, %v947_v19 }
0x13b0   :  { %954 = vrot.lane.b32.xlu1 %v951_v26, %s1873_s17  ;;  %v952_v27 = vmul.f32 %v951_v26, %v895_v61 }
0x1422   :  { %v955_v28 = vpop.permute.xlu1 %954 }
0x1423   :  { %v957_v29 = vmul.f32 %v955_v28, %v951_v26 }
0x1425   :  { %959 = vrot.lane.b32.xlu2 %v957_v29, %s1874_s18 }
0x147f   :  { %v960_v30 = vpop.permute.xlu2 %959 }
0x1480   :  { %v962_v35 = vadd.f32 %v960_v30, %v952_v27 }
0x1482   :  { %1794 = vtanh.f32 %v962_v35 }
0x1488   :  { %v1795_v20 = vpop.eup %1794 }
0x1489   :  { %965 = vrot.lane.b32.xlu0 %v1795_v20, %s1873_s17 }
0x14fb   :  { %v966_v36 = vpop.permute.xlu0 %965 }
0x14fc   :  { %v968_v37 = vmul.f32 %v966_v36, %v951_v26  ;;  %v1671_v26 = vld [vmem:[%s2335_s0 + $0x38] sm:$0xff] }
0x14fd   :  { %v568_v28 = vadd.f32 %v1671_v26, %v2149_v39 }
0x14fe   :  { %972 = vrot.lane.b32.xlu1 %v968_v37, %s1874_s18 }
0x14ff   :  { %v1673_v29 = vmul.f32 -1.442695, %v568_v28 }
0x1570   :  { %v973_v25 = vpop.permute.xlu1 %972 }
0x1571   :  { %1694 = vmatmul.msk.f32.vlgmr.msrb.gmra.mxu2 %vm55_vm7, %v973_v25 }
0x15f4   :  { %v993_v42 = vpop.f32.mrf.mxu2 }
0x15f5   :  { %v996_v43 = vadd.f32 %v993_v42, %v688_v41 }
0x15f7   :  { %v1695_v44 = vmul.f32 -1.442695, %v996_v43 }
0x15f9   :  { %1796 = vpow2.f32 %v1695_v44 }
0x15ff   :  { %v1797_v31 = vpop.eup %1796 }
0x1600   :  { %v1000_v32 = vadd.f32 1.0, %v1797_v31 }
0x1602   :  { %1798 = vrcp.f32 %v1000_v32  ;;  %v1012_v47 = vand.u32 2147483648, %v1000_v32  ;;  %v1010_v48 = vand.u32 2147483647, %v1000_v32  ;;  %vm1006_vm5 = vweird.f32 %v1000_v32 }
0x1604   :  { %v1013_v50 = vor.u32 1.1754944e-38, %v1012_v47  ;;  %vm1011_vm9 = vcmp.eq.f32.partialorder %v1010_v48, 8.507059e+37 }
0x1608   :  { %v1799_v45 = vpop.eup %1798 }
0x1609   :  { %v1002_v33 = vmul.f32 %v1799_v45, %v1000_v32  ;;  %vm1007_vm4 = vweird.f32 %v1799_v45 }
0x160a   :  { %vm1008_vm8 = vmor %vm1006_vm5, %vm1007_vm4 }
0x160b   :  { %v1003_v46 = vsub.f32 1.0, %v1002_v33 }
0x160d   :  { %v1004_v34 = vmul.f32 %v1799_v45, %v1003_v46 }
0x160f   :  { %v1005_v49 = vadd.f32 %v1799_v45, %v1004_v34 }
0x1611   :  { %v1009_v51 = vsel %vm1008_vm8, %v1799_v45, %v1005_v49 }
0x1612   :  { %v1014_v52 = vsel %vm1011_vm9, %v1013_v50, %v1009_v51 }
0x1613   :  { %v1016_v53 = vmul.f32 2.0, %v1014_v52 }
0x1615   :  { %v1696_v54 = vadd.f32 -1.0, %v1016_v53 }
0x1617   :  { %v1018_v55 = vsel %vm1963_vm6, %v1696_v54, %v1014_v52  ;;  %v693_v54 = vpop.f32.mrf.mxu0 }
0x1618   :  { %1021 = vrot.lane.b32.xlu2 %v1018_v55, %s1873_s17  ;;  %v1019_v58 = vmul.f32 %v1018_v55, %v962_v35 }
0x1672   :  { %v1022_v56 = vpop.permute.xlu2 %1021 }
0x1673   :  { %v1024_v57 = vmul.f32 %v1022_v56, %v1018_v55 }
0x1675   :  { %1026 = vrot.lane.b32.xlu0 %v1024_v57, %s1874_s18 }
0x16e7   :  { %v1027_v59 = vpop.permute.xlu0 %1026 }
0x16e8   :  { %v2172_v60 = vadd.f32 %v1027_v59, %v1019_v58 }
0x16ea   :  { %1800 = vtanh.f32 %v2172_v60 }
0x16f0   :  { %v1801_v61 = vpop.eup %1800 }
0x16f1   :  { %1032 = vrot.lane.b32.xlu1 %v1801_v61, %s1873_s17 }
0x1763   :  { %v1033_v62 = vpop.permute.xlu1 %1032 }
0x1764   :  { %v1035_v63 = vmul.f32 %v1033_v62, %v1018_v55  ;;  %v694_v55 = vadd.f32 %v2086_v40, %v693_v54  ;;  %v1233_v54 = vld [vmem:[%s2340_s5 + $0x10] sm:$0xff] }
0x1766   :  { %1039 = vrot.lane.b32.xlu2 %v1035_v63, %s1874_s18 }
0x17c0   :  { %v1040_v0 = vpop.permute.xlu2 %1039 }
0x17c1   :  { %1697 = vmatmul.msk.f32.vlgmr.msra.gmra.mxu3 %vm55_vm7, %v1040_v0 }
0x1844   :  { %v1060_v3 = vpop.f32.mrf.mxu3 }
0x1845   :  { %v1063_v5 = vadd.f32 %v1060_v3, %v691_v2 }
0x1847   :  { %v1698_v6 = vmul.f32 -1.442695, %v1063_v5 }
0x1849   :  { %1802 = vpow2.f32 %v1698_v6 }
0x184f   :  { %v1803_v7 = vpop.eup %1802 }
0x1850   :  { %v1067_v8 = vadd.f32 1.0, %v1803_v7 }
0x1852   :  { %1804 = vrcp.f32 %v1067_v8  ;;  %v1079_v12 = vand.u32 2147483648, %v1067_v8  ;;  %v1077_v14 = vand.u32 2147483647, %v1067_v8  ;;  %vm1073_vm11 = vweird.f32 %v1067_v8 }
0x1853   :  { %1806 = vpow2.f32 %v1673_v29 }
0x1854   :  { %v1080_v16 = vor.u32 1.1754944e-38, %v1079_v12  ;;  %vm1078_vm13 = vcmp.eq.f32.partialorder %v1077_v14, 8.507059e+37 }
0x1858   :  { %v1805_v9 = vpop.eup %1804 }
0x1859   :  { %v1069_v10 = vmul.f32 %v1805_v9, %v1067_v8  ;;  %vm1074_vm10 = vweird.f32 %v1805_v9  ;;  %v1807_v27 = vpop.eup %1806 }
0x185a   :  { %vm1075_vm12 = vmor %vm1073_vm11, %vm1074_vm10  ;;  %v572_v30 = vadd.f32 1.0, %v1807_v27 }
0x185b   :  { %v1070_v11 = vsub.f32 1.0, %v1069_v10 }
0x185c   :  { %1808 = vrcp.f32 %v572_v30  ;;  %v584_v38 = vand.u32 2147483648, %v572_v30  ;;  %vm578_vm15 = vweird.f32 %v572_v30  ;;  %v582_v41 = vand.u32 2147483647, %v572_v30 }
0x185d   :  { %v1071_v13 = vmul.f32 %v1805_v9, %v1070_v11 }
0x185e   :  { %v585_v43 = vor.u32 1.1754944e-38, %v584_v38  ;;  %vm583_vm1 = vcmp.eq.f32.partialorder %v582_v41, 8.507059e+37 }
0x185f   :  { %v1072_v15 = vadd.f32 %v1805_v9, %v1071_v13 }
0x1861   :  { %v1076_v17 = vsel %vm1075_vm12, %v1805_v9, %v1072_v15 }
0x1862   :  { %v1081_v18 = vsel %vm1078_vm13, %v1080_v16, %v1076_v17  ;;  %v1809_v35 = vpop.eup %1808 }
0x1863   :  { %v1083_v19 = vmul.f32 2.0, %v1081_v18  ;;  %v574_v20 = vmul.f32 %v1809_v35, %v572_v30  ;;  %vm579_vm14 = vweird.f32 %v1809_v35 }
0x1864   :  { %vm580_vm0 = vmor %vm578_vm15, %vm579_vm14 }
0x1865   :  { %v1699_v21 = vadd.f32 -1.0, %v1083_v19  ;;  %v575_v36 = vsub.f32 1.0, %v574_v20 }
0x1867   :  { %v1085_v23 = vsel %vm1963_vm6, %v1699_v21, %v1081_v18  ;;  %v576_v37 = vmul.f32 %v1809_v35, %v575_v36 }
0x1868   :  { %1088 = vrot.lane.b32.xlu0 %v1085_v23, %s1873_s17  ;;  %v1086_v46 = vmul.f32 %v1085_v23, %v2172_v60 }
0x1869   :  { %v577_v25 = vadd.f32 %v1809_v35, %v576_v37 }
0x186b   :  { %v581_v42 = vsel %vm580_vm0, %v1809_v35, %v577_v25 }
0x186c   :  { %v586_v44 = vsel %vm583_vm1, %v585_v43, %v581_v42 }
0x186d   :  { %v588_v32 = vmul.f32 2.0, %v586_v44 }
0x186f   :  { %v1674_v45 = vadd.f32 -1.0, %v588_v32 }
0x1871   :  { %v590_v33 = vsel %vm1963_vm6, %v1674_v45, %v586_v44 }
0x1872   :  { %v591_v9 = vmul.f32 %v590_v33, %v2133_v22 }
0x18da   :  { %v1089_v39 = vpop.permute.xlu0 %1088 }
0x18db   :  { %v1091_v31 = vmul.f32 %v1089_v39, %v1085_v23 }
0x18dd   :  { %1093 = vrot.lane.b32.xlu1 %v1091_v31, %s1874_s18 }
0x18e5   :  { %593 = vrot.lane.b32.xlu1 %v590_v33, %s1873_s17 }
0x194f   :  { %v1094_v47 = vpop.permute.xlu1 %1093 }
0x1950   :  { %v1096_v34 = vadd.f32 %v1094_v47, %v1086_v46 }
0x1952   :  { %1810 = vtanh.f32 %v1096_v34 }
0x1957   :  { %v594_v51 = vpop.permute.xlu1 %593 }
0x1958   :  { %v1811_v48 = vpop.eup %1810  ;;  %v596_v52 = vmul.f32 %v594_v51, %v590_v33  ;;  %v1238_v51 = vld [vmem:[%s2341_s6 + $0x18] sm:$0xff] }
0x1959   :  { %1099 = vrot.lane.b32.xlu2 %v1811_v48, %s1873_s17  ;;  %1252 = vmatpush.msrb.mxu3 %v1238_v51 }
0x195a   :  { %1345 = vmatpush.msrb.mxu2 %v1238_v51 }
0x19b3   :  { %v1100_v49 = vpop.permute.xlu2 %1099 }
0x19b4   :  { %v1102_v50 = vmul.f32 %v1100_v49, %v1085_v23 }
0x19b6   :  { %1106 = vrot.lane.b32.xlu0 %v1102_v50, %s1874_s18 }
0x19be   :  { %598 = vrot.lane.b32.xlu0 %v596_v52, %s1874_s18  ;;  %v1237_v52 = vld [vmem:[%s2341_s6 + $0x10] sm:$0xff] }
0x19bf   :  { %1253 = vmatpush.msrb.mxu3 %v1237_v52  ;;  %1346 = vmatpush.msrb.mxu2 %v1237_v52 }
0x1a28   :  { %v1107_v53 = vpop.permute.xlu0 %1106 }
0x1a29   :  { %1700 = vmatmul.msk.f32.vlgmr.msra.gmra.mxu1 %vm55_vm7, %v1107_v53  ;;  %v1234_v53 = vld [vmem:[%s2340_s5 + $0x18] sm:$0xff] }
0x1a2a   :  { %1277 = vmatpush.msrb.mxu1 %v1234_v53 }
0x1a2c   :  { %1278 = vmatpush.msrb.mxu1 %v1233_v54 }
0x1a30   :  { %v599_v7 = vpop.permute.xlu0 %598 }
0x1a31   :  { %v601_v11 = vadd.f32 %v599_v7, %v591_v9 }
0x1aa6   :  { %v1127_v56 = vpop.f32.mrf.mxu1 }
0x1aa7   :  { %v1130_v57 = vadd.f32 %v1127_v56, %v694_v55  ;;  %v1236_v55 = vld [vmem:[%s2341_s6 + $0x8] sm:$0xff] }
0x1aa8   :  { %v1232_v56 = vld [vmem:[%s2340_s5 + $0x8] sm:$0xff]  ;;  %1254 = vmatpush.msrb.mxu3 %v1236_v55  ;;  %1347 = vmatpush.msrb.mxu2 %v1236_v55 }
0x1aa9   :  { %v1701_v58 = vmul.f32 -1.442695, %v1130_v57  ;;  %v1235_v57 = vld [vmem:[%s2341_s6] sm:$0xff]  ;;  %1279 = vmatpush.msrb.mxu1 %v1232_v56  ;;  %s1875_s6 = smov 96  }
0x1aaa   :  { %1255 = vmatpush.msrb.mxu3 %v1235_v57  ;;  %1348 = vmatpush.msrb.mxu2 %v1235_v57 }
0x1aab   :  { %1812 = vpow2.f32 %v1701_v58  ;;  %v1231_v58 = vld [vmem:[%s2340_s5] sm:$0xff]  ;;  %1256 = vmatmul.f32.vlgmr.msrb.gmra.mxu3 %v1872_v4 }
0x1aac   :  { %1280 = vmatpush.msrb.mxu1 %v1231_v58  ;;  %1370 = vmatpush.msra.mxu3 %v1234_v53 }
0x1aae   :  { %1371 = vmatpush.msra.mxu3 %v1233_v54 }
0x1ab0   :  { %1372 = vmatpush.msra.mxu3 %v1232_v56 }
0x1ab1   :  { %v1813_v59 = vpop.eup %1812 }
0x1ab2   :  { %v1134_v60 = vadd.f32 1.0, %v1813_v59  ;;  %1373 = vmatpush.msra.mxu3 %v1231_v58 }
0x1ab4   :  { %1814 = vrcp.f32 %v1134_v60  ;;  %v1146_v0 = vand.u32 2147483648, %v1134_v60  ;;  %v1144_v2 = vand.u32 2147483647, %v1134_v60  ;;  %vm1140_vm3 = vweird.f32 %v1134_v60 }
0x1ab5   :  { %1816 = vtanh.f32 %v601_v11 }
0x1ab6   :  { %v1147_v5 = vor.u32 1.1754944e-38, %v1146_v0  ;;  %vm1145_vm5 = vcmp.eq.f32.partialorder %v1144_v2, 8.507059e+37  ;;  %v2247_v0 = vld [vmem:[%s2342_s7] ss:$0 sm:$0xff] }
0x1aba   :  { %v1815_v61 = vpop.eup %1814 }
0x1abb   :  { %v1136_v62 = vmul.f32 %v1815_v61, %v1134_v60  ;;  %vm1141_vm2 = vweird.f32 %v1815_v61  ;;  %v1817_v14 = vpop.eup %1816 }
0x1abc   :  { %vm1142_vm4 = vmor %vm1140_vm3, %vm1141_vm2 }
0x1abd   :  { %v1137_v63 = vsub.f32 1.0, %v1136_v62 }
0x1abf   :  { %v1138_v1 = vmul.f32 %v1815_v61, %v1137_v63 }
0x1ac1   :  { %v1139_v3 = vadd.f32 %v1815_v61, %v1138_v1 }
0x1ac3   :  { %v1143_v6 = vsel %vm1142_vm4, %v1815_v61, %v1139_v3 }
0x1ac4   :  { %v1148_v8 = vsel %vm1145_vm5, %v1147_v5, %v1143_v6 }
0x1ac5   :  { %v1150_v10 = vmul.f32 2.0, %v1148_v8 }
0x1ac7   :  { %v1702_v12 = vadd.f32 -1.0, %v1150_v10 }
0x1ac9   :  { %v1152_v13 = vsel %vm1963_vm6, %v1702_v12, %v1148_v8 }
0x1aca   :  { %1155 = vrot.lane.b32.xlu2 %v1152_v13, %s1873_s17  ;;  %v1153_v22 = vmul.f32 %v1152_v13, %v1096_v34 }
0x1ad2   :  { %604 = vrot.lane.b32.xlu2 %v1817_v14, %s1873_s17 }
0x1b24   :  { %v1156_v15 = vpop.permute.xlu2 %1155 }
0x1b25   :  { %v1158_v16 = vmul.f32 %v1156_v15, %v1152_v13 }
0x1b27   :  { %1160 = vrot.lane.b32.xlu1 %v1158_v16, %s1874_s18 }
0x1b2c   :  { %v605_v17 = vpop.permute.xlu2 %604 }
0x1b2d   :  { %v607_v18 = vmul.f32 %v605_v17, %v590_v33 }
0x1b2e   :  { %v1257_v63 = vpop.f32.mrf.mxu3 }
0x1b2f   :  { %609 = vrot.lane.b32.xlu1 %v607_v18, %s1874_s18 }
0x1b99   :  { %v1161_v19 = vpop.permute.xlu1 %1160 }
0x1b9a   :  { %v2203_v21 = vadd.f32 %v1161_v19, %v1153_v22 }
0x1b9c   :  { %1818 = vtanh.f32 %v2203_v21 }
0x1ba1   :  { %v610_v23 = vpop.permute.xlu1 %609 }
0x1ba2   :  { %v1819_v26 = vpop.eup %1818  ;;  %613 = vst.msk [vmem:[#allocation2 + $0x38] sm:$0xff] %vm55_vm7, %v610_v23 }
0x1ba3   :  { %1166 = vrot.lane.b32.xlu0 %v1819_v26, %s1873_s17 }
0x1ba9   :  { %v629_v28 = vld [vmem:[#allocation2 + $0x38] sm:$0xff] }
0x1baa   :  { %1682 = vmatmul.msk.f32.gmra.mxu0 %vm55_vm7, %v629_v28 }
0x1c15   :  { %v1167_v29 = vpop.permute.xlu0 %1166 }
0x1c16   :  { %v1169_v27 = vmul.f32 %v1167_v29, %v1152_v13 }
0x1c18   :  { %1173 = vrot.lane.b32.xlu2 %v1169_v27, %s1874_s18 }
0x1c27   :  { %v696_v35 = vpop.f32.mrf.mxu0 }
0x1c28   :  { %v697_v20 = vadd.f32 %v2086_v40, %v696_v35 }
0x1c72   :  { %v1174_v30 = vpop.permute.xlu2 %1173 }
0x1c73   :  { %1703 = vmatmul.msk.f32.vlgmr.msra.gmra.mxu2 %vm55_vm7, %v1174_v30 }
0x1cf6   :  { %v1194_v36 = vpop.f32.mrf.mxu2 }
0x1cf7   :  { %v1197_v37 = vadd.f32 %v1194_v36, %v697_v20 }
0x1cf9   :  { %v1704_v25 = vmul.f32 -1.442695, %v1197_v37  ;;  %v1421_v37 = vld [vmem:[%s2343_s8 + $0x18] sm:$0xff] }
0x1cfa   :  { %1459 = vmatpush.msra.mxu2 %v1421_v37 }
0x1cfb   :  { %1820 = vpow2.f32 %v1704_v25  ;;  %v1420_v25 = vld [vmem:[%s2343_s8 + $0x10] sm:$0xff] }
0x1cfc   :  { %1460 = vmatpush.msra.mxu2 %v1420_v25 }
0x1d01   :  { %v1821_v38 = vpop.eup %1820 }
0x1d02   :  { %v1201_v41 = vadd.f32 1.0, %v1821_v38  ;;  %v1425_v38 = vld [vmem:[%s2344_s9 + $0x18] sm:$0xff] }
0x1d03   :  { %1439 = vmatpush.msra.mxu1 %v1425_v38  ;;  %1527 = vmatpush.msrb.mxu3 %v1425_v38 }
0x1d04   :  { %1822 = vrcp.f32 %v1201_v41  ;;  %v1213_v39 = vand.u32 2147483648, %v1201_v41  ;;  %v1211_v32 = vand.u32 2147483647, %v1201_v41  ;;  %vm1207_vm9 = vweird.f32 %v1201_v41 }
0x1d06   :  { %v1214_v33 = vor.u32 1.1754944e-38, %v1213_v39  ;;  %vm1212_vm11 = vcmp.eq.f32.partialorder %v1211_v32, 8.507059e+37  ;;  %v1422_v39 = vld [vmem:[%s2344_s9] sm:$0xff] }
0x1d0a   :  { %v1823_v42 = vpop.eup %1822 }
0x1d0b   :  { %v1203_v43 = vmul.f32 %v1823_v42, %v1201_v41  ;;  %vm1208_vm8 = vweird.f32 %v1823_v42  ;;  %v1419_v41 = vld [vmem:[%s2343_s8 + $0x8] sm:$0xff] }
0x1d0c   :  { %vm1209_vm10 = vmor %vm1207_vm9, %vm1208_vm8  ;;  %1461 = vmatpush.msra.mxu2 %v1419_v41 }
0x1d0d   :  { %v1204_v44 = vsub.f32 1.0, %v1203_v43  ;;  %v1424_v43 = vld [vmem:[%s2344_s9 + $0x10] sm:$0xff] }
0x1d0e   :  { %1440 = vmatpush.msra.mxu1 %v1424_v43  ;;  %1528 = vmatpush.msrb.mxu3 %v1424_v43 }
0x1d0f   :  { %v1205_v31 = vmul.f32 %v1823_v42, %v1204_v44  ;;  %v1423_v44 = vld [vmem:[%s2344_s9 + $0x8] sm:$0xff] }
0x1d10   :  { %1441 = vmatpush.msra.mxu1 %v1423_v44  ;;  %1529 = vmatpush.msrb.mxu3 %v1423_v44 }
0x1d11   :  { %v1206_v45 = vadd.f32 %v1823_v42, %v1205_v31 }
0x1d12   :  { %1442 = vmatpush.msra.mxu1 %v1422_v39  ;;  %1530 = vmatpush.msrb.mxu3 %v1422_v39 }
0x1d13   :  { %v1210_v46 = vsel %vm1209_vm10, %v1823_v42, %v1206_v45  ;;  %v1418_v42 = vld [vmem:[%s2343_s8] sm:$0xff] }
0x1d14   :  { %v1215_v40 = vsel %vm1212_vm11, %v1214_v33, %v1210_v46  ;;  %1462 = vmatpush.msra.mxu2 %v1418_v42 }
0x1d15   :  { %v1217_v47 = vmul.f32 2.0, %v1215_v40 }
0x1d17   :  { %v1705_v34 = vadd.f32 -1.0, %v1217_v47 }
0x1d19   :  { %v1219_v48 = vsel %vm1963_vm6, %v1705_v34, %v1215_v40 }
0x1d1a   :  { %1222 = vrot.lane.b32.xlu0 %v1219_v48, %s1873_s17  ;;  %v1220_v59 = vmul.f32 %v1219_v48, %v2203_v21 }
0x1d8c   :  { %v1223_v49 = vpop.permute.xlu0 %1222 }
0x1d8d   :  { %v1225_v50 = vmul.f32 %v1223_v49, %v1219_v48 }
0x1d8f   :  { %1227 = vrot.lane.b32.xlu1 %v1225_v50, %s1874_s18 }
0x1e01   :  { %v1228_v60 = vpop.permute.xlu1 %1227 }
0x1e02   :  { %v1230_v61 = vadd.f32 %v1228_v60, %v1220_v59 }
0x1e04   :  { %1261 = vrot.lane.b32.xlu2 %v1230_v61, %s1875_s6  ;;  %v1353_v26 = vrot.slane %v1230_v61, 2 }
0x1e5e   :  { %v1262_v62 = vpop.permute.xlu2 %1261 }
0x1e5f   :  { %1706 = vmatmul.msk.f32.vlgmr.msrb.gmra.mxu1 %vm55_vm7, %v1262_v62 }
0x1e60   :  { %1552 = vmatpush.msrb.mxu1 %v1421_v37 }
0x1e62   :  { %1553 = vmatpush.msrb.mxu1 %v1420_v25 }
0x1e64   :  { %1554 = vmatpush.msrb.mxu1 %v1419_v41 }
0x1e66   :  { %1555 = vmatpush.msrb.mxu1 %v1418_v42 }
0x1e67   :  { %1443 = vmatmul.f32.vlgmr.msra.gmra.mxu1 %v1872_v4  ;;  %v2292_v4 = vld [vmem:[%s2345_s10] ss:$0 sm:$0xff] }
0x1edc   :  { %v1282_v1 = vpop.f32.mrf.mxu1 }
0x1edd   :  { %v1283_v2 = vadd.f32 %v1282_v1, %v1257_v63 }
0x1edf   :  { %v1288_v3 = vadd.f32 %v2247_v0, %v1283_v2 }
0x1ee1   :  { %v1707_v5 = vmul.f32 -1.442695, %v1288_v3 }
0x1ee3   :  { %1824 = vpow2.f32 %v1707_v5 }
0x1ee4   :  { %v1444_v47 = vpop.f32.mrf.mxu1 }
0x1ee9   :  { %v1825_v6 = vpop.eup %1824 }
0x1eea   :  { %v1292_v7 = vadd.f32 1.0, %v1825_v6 }
0x1eec   :  { %1826 = vrcp.f32 %v1292_v7  ;;  %v1304_v11 = vand.u32 2147483648, %v1292_v7  ;;  %v1302_v13 = vand.u32 2147483647, %v1292_v7  ;;  %vm1298_vm13 = vweird.f32 %v1292_v7 }
0x1eee   :  { %v1305_v15 = vor.u32 1.1754944e-38, %v1304_v11  ;;  %vm1303_vm15 = vcmp.eq.f32.partialorder %v1302_v13, 8.507059e+37 }
0x1ef2   :  { %v1827_v8 = vpop.eup %1826 }
0x1ef3   :  { %v1294_v9 = vmul.f32 %v1827_v8, %v1292_v7  ;;  %vm1299_vm12 = vweird.f32 %v1827_v8 }
0x1ef4   :  { %vm1300_vm14 = vmor %vm1298_vm13, %vm1299_vm12 }
0x1ef5   :  { %v1295_v10 = vsub.f32 1.0, %v1294_v9 }
0x1ef7   :  { %v1296_v12 = vmul.f32 %v1827_v8, %v1295_v10 }
0x1ef9   :  { %v1297_v14 = vadd.f32 %v1827_v8, %v1296_v12 }
0x1efb   :  { %v1301_v16 = vsel %vm1300_vm14, %v1827_v8, %v1297_v14 }
0x1efc   :  { %v1306_v17 = vsel %vm1303_vm15, %v1305_v15, %v1301_v16 }
0x1efd   :  { %v1308_v18 = vmul.f32 2.0, %v1306_v17 }
0x1eff   :  { %v1708_v22 = vadd.f32 -1.0, %v1308_v18 }
0x1f01   :  { %v1310_v19 = vsel %vm1963_vm6, %v1708_v22, %v1306_v17 }
0x1f02   :  { %1313 = vrot.lane.b32.xlu0 %v1310_v19, %s1873_s17  ;;  %v1311_v28 = vmul.f32 0.0, %v1310_v19 }
0x1f74   :  { %v1314_v21 = vpop.permute.xlu0 %1313 }
0x1f75   :  { %v1316_v23 = vmul.f32 %v1314_v21, %v1310_v19 }
0x1f77   :  { %1318 = vrot.lane.b32.xlu1 %v1316_v23, %s1874_s18 }
0x1f7f   :  { %1354 = vrot.lane.b32.xlu1 %v1353_v26, %s1875_s6 }
0x1fe9   :  { %v1319_v29 = vpop.permute.xlu1 %1318 }
0x1fea   :  { %v2255_v27 = vadd.f32 %v1319_v29, %v1311_v28 }
0x1fec   :  { %1828 = vtanh.f32 %v2255_v27 }
0x1ff1   :  { %v1355_v30 = vpop.permute.xlu1 %1354 }
0x1ff2   :  { %v1829_v35 = vpop.eup %1828  ;;  %1710 = vmatmul.msk.f32.vlgmr.msra.gmra.mxu3 %vm55_vm7, %v1355_v30 }
0x1ff3   :  { %1324 = vrot.lane.b32.xlu2 %v1829_v35, %s1873_s17 }
0x204d   :  { %v1325_v20 = vpop.permute.xlu2 %1324 }
0x204e   :  { %v1327_v36 = vmul.f32 %v1325_v20, %v1310_v19 }
0x2050   :  { %1329 = vrot.lane.b32.xlu0 %v1327_v36, %s1874_s18 }
0x2075   :  { %v1375_v32 = vpop.f32.mrf.mxu3 }
0x20c2   :  { %v1330_v31 = vpop.permute.xlu0 %1329 }
0x20c3   :  { %1709 = vmatmul.msk.f32.vlgmr.msrb.gmra.mxu2 %vm55_vm7, %v1330_v31 }
0x20cb   :  { %1713 = vmatmul.msk.f32.vlgmr.msra.gmra.mxu2 %vm55_vm7, %v1330_v31 }
0x2146   :  { %v1350_v45 = vpop.f32.mrf.mxu2 }
0x2147   :  { %v1376_v33 = vadd.f32 %v1375_v32, %v1350_v45 }
0x2149   :  { %v1378_v46 = vadd.f32 %v2247_v0, %v1376_v33 }
0x214b   :  { %v1711_v40 = vmul.f32 -1.442695, %v1378_v46 }
0x214d   :  { %1830 = vpow2.f32 %v1711_v40 }
0x214e   :  { %v1464_v34 = vpop.f32.mrf.mxu2 }
0x214f   :  { %v1465_v48 = vadd.f32 %v1464_v34, %v1444_v47 }
0x2151   :  { %v1470_v49 = vadd.f32 %v2292_v4, %v1465_v48 }
0x2153   :  { %v1831_v50 = vpop.eup %1830  ;;  %v1714_v51 = vmul.f32 -1.442695, %v1470_v49 }
0x2154   :  { %v1382_v52 = vadd.f32 1.0, %v1831_v50 }
0x2155   :  { %1832 = vpow2.f32 %v1714_v51 }
0x2156   :  { %1834 = vrcp.f32 %v1382_v52  ;;  %v1394_v58 = vand.u32 2147483648, %v1382_v52  ;;  %v1392_v60 = vand.u32 2147483647, %v1382_v52  ;;  %vm1388_vm1 = vweird.f32 %v1382_v52 }
0x2158   :  { %v1395_v63 = vor.u32 1.1754944e-38, %v1394_v58  ;;  %vm1393_vm3 = vcmp.eq.f32.partialorder %v1392_v60, 8.507059e+37  ;;  %v1597_v58 = vld [vmem:[%s2346_s11 + $0x18] sm:$0xff]  ;;  %v1594_v60 = vld [vmem:[%s2346_s11] sm:$0xff] }
0x2159   :  { %1619 = vmatpush.msrb.mxu2 %v1597_v58 }
0x215b   :  { %v1833_v53 = vpop.eup %1832 }
0x215c   :  { %v1835_v54 = vpop.eup %1834  ;;  %v1474_v55 = vadd.f32 1.0, %v1833_v53 }
0x215d   :  { %v1384_v56 = vmul.f32 %v1835_v54, %v1382_v52  ;;  %vm1389_vm0 = vweird.f32 %v1835_v54 }
0x215e   :  { %1836 = vrcp.f32 %v1474_v55  ;;  %vm1390_vm2 = vmor %vm1388_vm1, %vm1389_vm0  ;;  %v1486_v6 = vand.u32 2147483648, %v1474_v55  ;;  %v1484_v9 = vand.u32 2147483647, %v1474_v55  ;;  %vm1480_vm5 = vweird.f32 %v1474_v55 }
0x215f   :  { %v1385_v57 = vsub.f32 1.0, %v1384_v56 }
0x2160   :  { %v1487_v12 = vor.u32 1.1754944e-38, %v1486_v6  ;;  %vm1485_vm9 = vcmp.eq.f32.partialorder %v1484_v9, 8.507059e+37 }
0x2161   :  { %v1386_v59 = vmul.f32 %v1835_v54, %v1385_v57 }
0x2163   :  { %v1387_v61 = vadd.f32 %v1835_v54, %v1386_v59  ;;  %v1596_v59 = vld [vmem:[%s2346_s11 + $0x10] sm:$0xff]  ;;  %s1636_s11 = sshll.u32 %s2348_s13, 4  ;;  %s1637_s11 = int_to_ptr.hbm [resolvable:$true] %s1636_s11 }
0x2164   :  { %v1837_v62 = vpop.eup %1836  ;;  %1620 = vmatpush.msrb.mxu2 %v1596_v59 }
0x2165   :  { %v1391_v0 = vsel %vm1390_vm2, %v1835_v54, %v1387_v61  ;;  %v1476_v1 = vmul.f32 %v1837_v62, %v1474_v55  ;;  %vm1481_vm4 = vweird.f32 %v1837_v62 }
0x2166   :  { %v1396_v2 = vsel %vm1393_vm3, %v1395_v63, %v1391_v0  ;;  %vm1482_vm8 = vmor %vm1480_vm5, %vm1481_vm4  ;;  %1621 = vmatpush.msrb.mxu2 %v1595_v24 }
0x2167   :  { %v1398_v3 = vmul.f32 2.0, %v1396_v2  ;;  %v1477_v5 = vsub.f32 1.0, %v1476_v1  ;;  %v1729_v1 = vld [vmem:[%s2347_s12] ss:$0 sm:$0xff] }
0x2168   :  { %1622 = vmatpush.msrb.mxu2 %v1594_v60 }
0x2169   :  { %v1712_v7 = vadd.f32 -1.0, %v1398_v3  ;;  %v1478_v8 = vmul.f32 %v1837_v62, %v1477_v5 }
0x216b   :  { %v1400_v10 = vsel %vm1963_vm6, %v1712_v7, %v1396_v2  ;;  %v1479_v11 = vadd.f32 %v1837_v62, %v1478_v8 }
0x216c   :  { %1403 = vrot.lane.b32.xlu0 %v1400_v10, %s1873_s17  ;;  %v1401_v23 = vmul.f32 %v1400_v10, %v2255_v27 }
0x216d   :  { %v1483_v13 = vsel %vm1482_vm8, %v1837_v62, %v1479_v11 }
0x216e   :  { %v1488_v14 = vsel %vm1485_vm9, %v1487_v12, %v1483_v13 }
0x216f   :  { %v1490_v15 = vmul.f32 2.0, %v1488_v14 }
0x2171   :  { %v1715_v16 = vadd.f32 -1.0, %v1490_v15 }
0x2173   :  { %v1492_v17 = vsel %vm1963_vm6, %v1715_v16, %v1488_v14 }
0x2174   :  { %1495 = vrot.lane.b32.xlu2 %v1492_v17, %s1873_s17  ;;  %v1493_v29 = vmul.f32 0.0, %v1492_v17 }
0x21ce   :  { %v1496_v18 = vpop.permute.xlu2 %1495 }
0x21cf   :  { %v1498_v22 = vmul.f32 %v1496_v18, %v1492_v17 }
0x21d1   :  { %1500 = vrot.lane.b32.xlu1 %v1498_v22, %s1874_s18 }
0x21de   :  { %v1404_v19 = vpop.permute.xlu0 %1403 }
0x21df   :  { %v1406_v21 = vmul.f32 %v1404_v19, %v1400_v10 }
0x21e1   :  { %1408 = vrot.lane.b32.xlu2 %v1406_v21, %s1874_s18 }
0x223b   :  { %v1409_v26 = vpop.permute.xlu2 %1408 }
0x223c   :  { %v1411_v28 = vadd.f32 %v1409_v26, %v1401_v23 }
0x223e   :  { %1838 = vtanh.f32 %v1411_v28 }
0x2243   :  { %v1501_v30 = vpop.permute.xlu1 %1500 }
0x2244   :  { %v1839_v35 = vpop.eup %1838  ;;  %v1503_v20 = vadd.f32 %v1501_v30, %v1493_v29 }
0x2245   :  { %1414 = vrot.lane.b32.xlu1 %v1839_v35, %s1873_s17 }
0x2246   :  { %1840 = vtanh.f32 %v1503_v20 }
0x224c   :  { %v1841_v36 = vpop.eup %1840 }
0x224d   :  { %1506 = vrot.lane.b32.xlu0 %v1841_v36, %s1873_s17 }
0x22b7   :  { %v1415_v37 = vpop.permute.xlu1 %1414 }
0x22b8   :  { %v1417_v25 = vmul.f32 %v1415_v37, %v1400_v10 }
0x22ba   :  { %1536 = vrot.lane.b32.xlu0 %v1417_v25, %s1874_s18 }
0x22bf   :  { %v1507_v38 = vpop.permute.xlu0 %1506 }
0x22c0   :  { %v1509_v41 = vmul.f32 %v1507_v38, %v1492_v17 }
0x22c2   :  { %1511 = vrot.lane.b32.xlu2 %v1509_v41, %s1874_s18 }
0x231c   :  { %v1512_v27 = vpop.permute.xlu2 %1511 }
0x231d   :  { %1716 = vmatmul.msk.f32.vlgmr.msrb.gmra.mxu3 %vm55_vm7, %v1512_v27 }
0x232c   :  { %v1537_v42 = vpop.permute.xlu0 %1536 }
0x232d   :  { %1717 = vmatmul.msk.f32.vlgmr.msrb.gmra.mxu1 %vm55_vm7, %v1537_v42 }
0x23a0   :  { %v1532_v43 = vpop.f32.mrf.mxu3 }
0x23aa   :  { %v1557_v44 = vpop.f32.mrf.mxu1 }
0x23ab   :  { %v1558_v39 = vadd.f32 %v1557_v44, %v1532_v43 }
0x23ad   :  { %v1560_v31 = vadd.f32 %v2292_v4, %v1558_v39 }
0x23af   :  { %v1718_v32 = vmul.f32 -1.442695, %v1560_v31 }
0x23b1   :  { %1842 = vpow2.f32 %v1718_v32 }
0x23b7   :  { %v1843_v45 = vpop.eup %1842 }
0x23b8   :  { %v1564_v33 = vadd.f32 1.0, %v1843_v45 }
0x23ba   :  { %1844 = vrcp.f32 %v1564_v33  ;;  %v1576_v34 = vand.u32 2147483648, %v1564_v33  ;;  %v1574_v49 = vand.u32 2147483647, %v1564_v33  ;;  %vm1570_vm11 = vweird.f32 %v1564_v33 }
0x23bc   :  { %v1577_v51 = vor.u32 1.1754944e-38, %v1576_v34  ;;  %vm1575_vm13 = vcmp.eq.f32.partialorder %v1574_v49, 8.507059e+37 }
0x23c0   :  { %v1845_v46 = vpop.eup %1844 }
0x23c1   :  { %v1566_v40 = vmul.f32 %v1845_v46, %v1564_v33  ;;  %vm1571_vm10 = vweird.f32 %v1845_v46 }
0x23c2   :  { %vm1572_vm12 = vmor %vm1570_vm11, %vm1571_vm10 }
0x23c3   :  { %v1567_v47 = vsub.f32 1.0, %v1566_v40 }
0x23c5   :  { %v1568_v48 = vmul.f32 %v1845_v46, %v1567_v47 }
0x23c7   :  { %v1569_v50 = vadd.f32 %v1845_v46, %v1568_v48 }
0x23c9   :  { %v1573_v52 = vsel %vm1572_vm12, %v1845_v46, %v1569_v50 }
0x23ca   :  { %v1578_v53 = vsel %vm1575_vm13, %v1577_v51, %v1573_v52 }
0x23cb   :  { %v1580_v4 = vmul.f32 2.0, %v1578_v53 }
0x23cd   :  { %v1719_v54 = vadd.f32 -1.0, %v1580_v4 }
0x23cf   :  { %v1582_v55 = vsel %vm1963_vm6, %v1719_v54, %v1578_v53  ;;  %vm1627_vm6 = vcmask 9216  }
0x23d0   :  { %1585 = vrot.lane.b32.xlu1 %v1582_v55, %s1873_s17  ;;  %v1583_v61 = vmul.f32 %v1582_v55, %v1503_v20 }
0x2442   :  { %v1586_v56 = vpop.permute.xlu1 %1585 }
0x2443   :  { %v1588_v57 = vmul.f32 %v1586_v56, %v1582_v55 }
0x2445   :  { %1590 = vrot.lane.b32.xlu2 %v1588_v57, %s1874_s18 }
0x249f   :  { %v1591_v62 = vpop.permute.xlu2 %1590 }
0x24a0   :  { %v1593_v63 = vadd.f32 %v1591_v62, %v1583_v61 }
0x24a2   :  { %1603 = vrot.lane.b32.xlu0 %v1593_v63, %s1875_s6 }
0x2514   :  { %v1604_v0 = vpop.permute.xlu0 %1603 }
0x2515   :  { %1720 = vmatmul.msk.f32.vlgmr.msrb.gmra.mxu2 %vm55_vm7, %v1604_v0 }
0x2598   :  { %v1624_v2 = vpop.f32.mrf.mxu2 }
0x2599   :  { %v1625_v3 = vadd.f32 %v1729_v1, %v1624_v2 }
0x259b   :  { %1628 = vst.msk [vmem:[#allocation4] sm:$0x3] %vm1627_vm6, %v1625_v3 }
0x259c   :  { %1639 = dma.vmem_to_hbm [thread:$0]  %s1635_s30, 32, %s1637_s11, [#allocation5]  }
0x259d   :  { %1870 = dma.done.wait [#allocation5], 32  }
0x259e   :  { %1871 = vsyncadd [#allocation5], 4294967264 }
0x259f   :  { %1644 = vsyncpa [#allocation5], 1 }

</bundles_post_ra>
